<compile_context>
chip_gen: v7x
topology: tpu7x:2x2x1
jax: 0.10.0
libtpu: 0.0.40
codegen_flags: <defaults>
</compile_context>

<pallas_src>
import math

import jax
import jax.numpy as jnp
from jax import lax
from jax.experimental import pallas as pl
from jax.experimental.pallas import tpu as pltpu

N_ROI = 116      # fixed by model_gnn: kernel_p / kernel_n are (116, in_dim)
ROI_PAD = 128    # lane-aligned padding of the ROI dims (done once at data prep)
IN_DIM = 8       # in_dim
HIDDEN = 8       # hidden_dim (must equal in_dim)
OUT_DIM = 2      # out_dim (classes)
LIN1_OUT = 16
C = 0.85         # GCN residual coefficient

# --- packed parameter slab layout: one (P_ROWS, 128) f32 array ---------------
_R_KPT = 0       # rows [0:8),     cols [0:116)  kernel_p^T
_R_KNT = 8       # rows [8:16),    cols [0:116)  kernel_n^T
_R_KRHS = 16     # rows [16:144),  cols [0:16)   fused [kernel_p | kernel_n] (128,16)
_R_W = 144       # six 8x8 GCN kernels at rows [144+8t : 152+8t), cols [0:8)
_R_L1W = 192     # rows [192:320), cols [0:16)   lin1 weight (128, 16)
_R_L1B = 320     # row 320,        cols [0:16)   lin1 bias
_R_L2B = 321     # row 321,        cols [0:2)    lin2 bias
_R_L2W = 328     # rows [328:344), cols [0:2)    lin2 weight (16, 2)
P_ROWS = 344


def _eye2d(d):
    r = lax.broadcasted_iota(jnp.int32, (d, d), 0)
    c = lax.broadcasted_iota(jnp.int32, (d, d), 1)
    return (r == c).astype(jnp.float32)


def _fused_forward_kernel(adj_ref, prm_ref, out_ref):
    BB = adj_ref.shape[1]          # batch block
    d = IN_DIM
    f32 = jnp.float32

    # ---- shared parameters (constant index map -> fetched once) -------------
    kpT = jnp.maximum(prm_ref[_R_KPT:_R_KPT + d, :], 0.0)      # (8,128) relu'd, pads 0
    knT = jnp.maximum(prm_ref[_R_KNT:_R_KNT + d, :], 0.0)
    k_rhs = jnp.maximum(prm_ref[_R_KRHS:_R_KRHS + ROI_PAD, 0:2 * d], 0.0
                        ).astype(jnp.bfloat16)                  # (128,16) [Kp | Kn]
    gw = [prm_ref[_R_W + 8 * t:_R_W + 8 * (t + 1), 0:d] for t in range(6)]
    l1w = prm_ref[_R_L1W:_R_L1W + 2 * d * HIDDEN, 0:LIN1_OUT]   # (128, 16)
    l1b = prm_ref[_R_L1B:_R_L1B + 1, 0:LIN1_OUT]                # (1, 16)
    l2b = prm_ref[_R_L2B:_R_L2B + 1, 0:OUT_DIM]                 # (1, 2)
    l2w = prm_ref[_R_L2W:_R_L2W + LIN1_OUT, 0:OUT_DIM]          # (16, 2)

    eye3 = _eye2d(d)[None]                                      # (1, d, d)

    def mm(a, b):           # plain 2-D MXU matmul, f32 accumulation
        return jnp.dot(a, b, preferred_element_type=f32)

    def bmm(x, y):          # (BB,m,k) @ (BB,k,n) -> (BB,m,n)
        return lax.dot_general(x, y, (((2,), (1,)), ((0,), (0,))),
                               preferred_element_type=f32)

    def mm_shared_rhs(x, w):
        # (BB,d,d) @ (d,d) with a shared RHS as ONE 2-D matmul (layout-preserving
        # reshapes: d == 8 is a full sublane tile).
        return mm(x.reshape(BB * d, d), w).reshape(BB, d, d)

    def softplus(x):
        # numerically-stable softplus (log1p kept as log(1+x) for simple lowering)
        return jnp.maximum(x, 0.0) + jnp.log(1.0 + jnp.exp(-jnp.abs(x)))

    def gcn(x, red, w):
        if x is None:
            axw = mm_shared_rhs(red, w)
        else:
            axw = bmm(red, mm_shared_rhs(x, w))
        y = jnp.maximum(eye3 + C * axw, 0.0)
        col_mean = jnp.mean(y, axis=-2, keepdims=True) + 1e-6
        return softplus(y / col_mean)

    def branch(chan, kT, col0, ws):
        # dim_reduce:   AF = A @ relu(K)  as ONE 2-D MXU matmul with shared RHS,
        #               red = relu(K)^T @ AF  stays a tiny batched contraction.
        adj = adj_ref[chan]                                     # (BB,128,128) bf16
        af = mm(adj.reshape(BB * ROI_PAD, ROI_PAD),
                k_rhs[:, col0:col0 + d])                        # (BB*128, 8) f32
        af = af.reshape(BB, ROI_PAD, d)
        red = bmm(jnp.broadcast_to(kT[None], (BB, d, ROI_PAD)), af)   # (BB,d,d)
        c1 = gcn(None, red, ws[0])
        c2 = gcn(c1, red, ws[1])
        c3 = gcn(c2, red, ws[2])
        return c3

    p3 = branch(0, kpT, 0, gw[0:3])
    n3 = branch(1, knT, d, gw[3:6])

    # torch: cat([p3, n3], -1).reshape(B, 2*d*h) -- row-major flatten realised
    # as a lane concatenation so lin1 is one batched (1,128)@(128,16) matmul.
    cc = jnp.concatenate([p3, n3], axis=-1)                      # (BB, d, 2h)
    flat = jnp.concatenate([cc[:, i:i + 1, :] for i in range(d)],
                           axis=-1)                              # (BB, 1, 128)

    def bcast(m):
        return jnp.broadcast_to(m[None], (BB,) + m.shape)

    hidden = bmm(flat, bcast(l1w)) + l1b[None]                   # (BB, 1, 16)
    logits = bmm(hidden, bcast(l2w)) + l2b[None]                 # (BB, 1, 2)
    m = jnp.max(logits, axis=-1, keepdims=True)
    e = jnp.exp(logits - m)
    out_ref[...] = e / jnp.sum(e, axis=-1, keepdims=True)


# ----------------------------------------------------------------------------
# Host-side helpers (data prep + parameter packing: do these ONCE, outside the
# per-step forward path).
# ----------------------------------------------------------------------------
def prepare_adjacency(A, batch_block=16):
    """One-time data prep: channel-major layout, zero-pad ROI 116->128 and
    batch -> multiple of the batch block, cast to bf16 (halves HBM traffic)."""
    A = jnp.asarray(A)
    B = int(A.shape[0])
    assert A.shape[1:] == (2, N_ROI, N_ROI), A.shape
    # keep >= 2 grid steps so the "parallel" axis can shard across TensorCores
    BB = int(max(1, min(int(batch_block), max(1, B // 2))))
    G = -(-B // BB)
    B_pad = G * BB
    A_cm = jnp.moveaxis(A.astype(jnp.bfloat16), 1, 0)            # (2, B, 116, 116)
    A_prep = jnp.pad(A_cm, ((0, 0), (0, B_pad - B),
                            (0, ROI_PAD - N_ROI), (0, ROI_PAD - N_ROI)))
    return A_prep, BB


def pack_params(p):
    """Pack all model parameters into one (P_ROWS, 128) f32 slab (one DMA)."""
    assert IN_DIM == HIDDEN, "model_gnn requires in_dim == hidden_dim"
    P = jnp.zeros((P_ROWS, ROI_PAD), jnp.float32)
    kp = jnp.asarray(p["kernel_p"], jnp.float32)                 # (116, 8)
    kn = jnp.asarray(p["kernel_n"], jnp.float32)
    P = P.at[_R_KPT:_R_KPT + IN_DIM, 0:N_ROI].set(kp.T)
    P = P.at[_R_KNT:_R_KNT + IN_DIM, 0:N_ROI].set(kn.T)
    P = P.at[_R_KRHS:_R_KRHS + N_ROI, 0:IN_DIM].set(kp)
    P = P.at[_R_KRHS:_R_KRHS + N_ROI, IN_DIM:2 * IN_DIM].set(kn)
    for t, name in enumerate(("w1_p", "w2_p", "w3_p", "w1_n", "w2_n", "w3_n")):
        P = P.at[_R_W + 8 * t:_R_W + 8 * (t + 1), 0:HIDDEN].set(
            jnp.asarray(p[name], jnp.float32))
    P = P.at[_R_L1W:_R_L1W + 2 * IN_DIM * HIDDEN, 0:LIN1_OUT].set(
        jnp.asarray(p["lin1_w"], jnp.float32))
    P = P.at[_R_L1B, 0:LIN1_OUT].set(jnp.asarray(p["lin1_b"], jnp.float32))
    P = P.at[_R_L2B, 0:OUT_DIM].set(jnp.asarray(p["lin2_b"], jnp.float32))
    P = P.at[_R_L2W:_R_L2W + LIN1_OUT, 0:OUT_DIM].set(
        jnp.asarray(p["lin2_w"], jnp.float32))
    return P


def model_gnn_forward(A_prep, prm_slab, batch, batch_block):
    """Run the fused forward kernel on pre-prepared inputs; returns softmax probs."""
    assert A_prep.shape[0] == 2 and A_prep.shape[2:] == (ROI_PAD, ROI_PAD)
    B_pad = A_prep.shape[1]
    BB = int(batch_block)
    assert B_pad % BB == 0
    G = B_pad // BB

    # advisory cost hint: the kernel is HBM-bound on the adjacency stream
    flops = B_pad * (2 * (2 * ROI_PAD * ROI_PAD * IN_DIM          # A @ relu(K)
                          + 2 * IN_DIM * ROI_PAD * IN_DIM         # relu(K)^T @ AF
                          + 5 * 2 * IN_DIM ** 3)                  # GCN matmuls
                     + 2 * 2 * IN_DIM * HIDDEN * LIN1_OUT
                     + 2 * LIN1_OUT * OUT_DIM)
    transcendentals = B_pad * (6 * IN_DIM * HIDDEN * 2 + OUT_DIM)
    bytes_accessed = (2 * B_pad * ROI_PAD * ROI_PAD * 2           # bf16 adjacency
                      + P_ROWS * ROI_PAD * 4                      # f32 parameter slab
                      + B_pad * OUT_DIM * 4)                      # f32 probabilities

    probs = pl.pallas_call(
        _fused_forward_kernel,
        out_shape=jax.ShapeDtypeStruct((B_pad, 1, OUT_DIM), jnp.float32),
        grid=(G,),
        in_specs=[
            pl.BlockSpec((2, BB, ROI_PAD, ROI_PAD), lambda g: (0, g, 0, 0)),
            pl.BlockSpec((P_ROWS, ROI_PAD), lambda g: (0, 0)),
        ],
        out_specs=pl.BlockSpec((BB, 1, OUT_DIM), lambda g: (g, 0, 0)),
        compiler_params=pltpu.CompilerParams(
            dimension_semantics=("parallel",)),
        cost_estimate=pl.CostEstimate(flops=int(flops),
                                      transcendentals=int(transcendentals),
                                      bytes_accessed=int(bytes_accessed)),
    )(A_prep, prm_slab)
    return probs[:batch, 0, :]


def regularization_loss(params):
    """Parameter-only regularisation loss (hoisted out of the Pallas kernel,
    exactly the terms the torch module accumulates in self.losses)."""
    with jax.default_matmul_precision("highest"):
        def dr(kernel, var_pen):
            kr = jnp.maximum(kernel, 0.0)
            gram = kr.T @ kr
            diag = jnp.diag(gram)
            ortho = 0.2 * jnp.sum((gram - jnp.diag(diag)) ** 2)
            var = var_pen * jnp.var(diag, ddof=1)
            neg = 0.1 * jnp.sum(jnp.maximum(1e-6 - kernel, 0.0))
            l1 = 0.05 * jnp.sum(jnp.abs(kr))
            return ortho + var + neg + l1

        loss = dr(params["kernel_p"], 0.3) + dr(params["kernel_n"], 0.5)
        for name in ("w1_p", "w2_p", "w3_p", "w1_n", "w2_n", "w3_n"):
            loss = loss + 0.2 * jnp.sum(jnp.maximum(1e-6 - params[name], 0.0))
    return loss


def model_gnn_apply(A, params, batch_block=16):
    """Convenience end-to-end apply.  In a real training loop, prepare_adjacency
    and pack_params should be hoisted out and reused across steps."""
    A_prep, BB = prepare_adjacency(A, batch_block)
    prm = pack_params(params)
    probs = model_gnn_forward(A_prep, prm, int(A.shape[0]), BB)
    return probs, regularization_loss(params)


def init_params(key):
    ks = jax.random.split(key, 12)

    def xavier(k, shape):
        bound = math.sqrt(6.0 / (shape[0] + shape[1]))
        return jax.random.uniform(k, shape, jnp.float32, -bound, bound)

    return {
        "kernel_p": xavier(ks[0], (N_ROI, IN_DIM)),
        "kernel_n": xavier(ks[1], (N_ROI, IN_DIM)),
        "w1_p": xavier(ks[2], (IN_DIM, HIDDEN)),
        "w2_p": xavier(ks[3], (HIDDEN, HIDDEN)),
        "w3_p": xavier(ks[4], (HIDDEN, HIDDEN)),
        "w1_n": xavier(ks[5], (IN_DIM, HIDDEN)),
        "w2_n": xavier(ks[6], (HIDDEN, HIDDEN)),
        "w3_n": xavier(ks[7], (HIDDEN, HIDDEN)),
        "lin1_w": xavier(ks[8], (2 * IN_DIM * HIDDEN, LIN1_OUT)),   # (in, out)
        "lin1_b": jax.random.uniform(ks[9], (LIN1_OUT,), jnp.float32, -0.1, 0.1),
        "lin2_w": xavier(ks[10], (LIN1_OUT, OUT_DIM)),
        "lin2_b": jax.random.uniform(ks[11], (OUT_DIM,), jnp.float32, -0.1, 0.1),
    }


def _reference_forward(A, p, adj_dtype=jnp.float32):
    """Plain-JAX reference mirroring the PyTorch module.  `adj_dtype` lets the
    reference quantise the adjacency the same way the kernel does (bf16)."""
    A = jnp.asarray(A, jnp.float32)
    with jax.default_matmul_precision("highest"):
        adj_p, adj_n = A[:, 0], A[:, 1]
        losses = []

        def softplus(x):
            return jnp.maximum(x, 0.0) + jnp.log1p(jnp.exp(-jnp.abs(x)))

        def dim_reduce(adj, kernel, var_pen):
            kr = jnp.maximum(kernel, 0.0)
            af = jnp.einsum('bij,jk->bik', adj.astype(adj_dtype),
                            kr.astype(adj_dtype),
                            preferred_element_type=jnp.float32)
            red = jnp.einsum('ji,bjk->bik', kr, af)
            gram = kr.T @ kr
            diag = jnp.diag(gram)
            losses.append(0.2 * jnp.sum((gram - jnp.diag(diag)) ** 2))
            losses.append(var_pen * jnp.var(diag, ddof=1))
            losses.append(0.1 * jnp.sum(jnp.maximum(1e-6 - kernel, 0.0)))
            losses.append(0.05 * jnp.sum(jnp.abs(kr)))
            return red

        def gcn(x, adj, w):
            axw = jnp.einsum('bij,jk->bik', adj, w) if x is None else adj @ (x @ w)
            y = jnp.maximum(jnp.eye(w.shape[1], dtype=jnp.float32) + C * axw, 0.0)
            cm = jnp.mean(y, axis=-2, keepdims=True) + 1e-6
            losses.append(0.2 * jnp.sum(jnp.maximum(1e-6 - w, 0.0)))
            return softplus(y / cm)

        rp = dim_reduce(adj_p, p["kernel_p"], 0.3)
        p1 = gcn(None, rp, p["w1_p"])
        p2 = gcn(p1, rp, p["w2_p"])
        p3 = gcn(p2, rp, p["w3_p"])
        rn = dim_reduce(adj_n, p["kernel_n"], 0.5)
        n1 = gcn(None, rn, p["w1_n"])
        n2 = gcn(n1, rn, p["w2_n"])
        n3 = gcn(n2, rn, p["w3_n"])
        cc = jnp.concatenate([p3, n3], axis=-1).reshape(A.shape[0], -1)
        hid = cc @ p["lin1_w"] + p["lin1_b"]
        logits = hid @ p["lin2_w"] + p["lin2_b"]
        return jax.nn.softmax(logits, axis=-1), sum(losses)


if __name__ == "__main__":
    key = jax.random.PRNGKey(0)
    pkey, akey = jax.random.split(key)
    params = init_params(pkey)

    B = 4
    A = jax.random.uniform(akey, (B, 2, N_ROI, N_ROI), jnp.float32, 0.0, 1.0)
    A = 0.5 * (A + jnp.swapaxes(A, -1, -2))   # symmetric connectivity matrices

    # One-time data prep (channel-major, zero-padded, bf16) + parameter packing.
    # B=4 -> BB=2, grid of 2 "parallel" steps (exercises the megacore path).
    A_prep, BB = prepare_adjacency(A, batch_block=16)
    prm = pack_params(params)

    probs = model_gnn_forward(A_prep, prm, B, BB)
    loss = regularization_loss(params)
    jax.block_until_ready((probs, loss))

    assert probs.shape == (B, OUT_DIM) and probs.dtype == jnp.float32

    # Validate against a plain-JAX reference that quantises the adjacency the
    # same way (bf16) but otherwise runs in f32; loss is plain JAX in both.
    ref_probs, ref_loss = _reference_forward(A, params, adj_dtype=jnp.bfloat16)
    assert bool(jnp.allclose(probs, ref_probs, rtol=2e-3, atol=2e-3))
    assert bool(jnp.allclose(loss, ref_loss, rtol=1e-4, atol=1e-5))
    print("KERNEL_OK")
</pallas_src>

<mosaic_0001>
module attributes {stable_mosaic.version = 11 : i64} {
  func.func @_fused_forward_kernel(%arg0: i32, %arg1: memref<2x2x128x128xbf16, #tpu.memory_space<vmem>>, %arg2: memref<344x128xf32, #tpu.memory_space<vmem>>, %arg3: memref<2x1x2xf32, #tpu.memory_space<vmem>>) attributes {dimension_semantics = [#tpu.dimension_semantics<parallel>], iteration_bounds = array<i64: 2>, scalar_prefetch = 0 : i64, scratch_operands = 0 : i64, tpu.core_type = #tpu.core_type<tc>, window_params = [{transform_indices = @transform_0, window_bounds = array<i64: 2, 2, 128, 128>}, {pipeline_mode = #tpu.pipeline_mode<synchronous>, transform_indices = @transform_1, window_bounds = array<i64: 344, 128>}, {transform_indices = @transform_2, window_bounds = array<i64: 2, 1, 2>}]} {
    %c0 = arith.constant 0 : index
    %c0_0 = arith.constant 0 : index
    %0 = vector.load %arg2[%c0, %c0_0] : memref<344x128xf32, #tpu.memory_space<vmem>>, vector<8x128xf32>
    %cst = arith.constant 0.000000e+00 : f32
    %1 = vector.broadcast %cst : f32 to vector<8x128xf32>
    %2 = arith.maximumf %0, %1 : vector<8x128xf32>
    %c8 = arith.constant 8 : index
    %c0_1 = arith.constant 0 : index
    %3 = vector.load %arg2[%c8, %c0_1] : memref<344x128xf32, #tpu.memory_space<vmem>>, vector<8x128xf32>
    %cst_2 = arith.constant 0.000000e+00 : f32
    %4 = vector.broadcast %cst_2 : f32 to vector<8x128xf32>
    %5 = arith.maximumf %3, %4 : vector<8x128xf32>
    %c16 = arith.constant 16 : index
    %c0_3 = arith.constant 0 : index
    %6 = vector.load %arg2[%c16, %c0_3] : memref<344x128xf32, #tpu.memory_space<vmem>>, vector<128x16xf32>
    %cst_4 = arith.constant 0.000000e+00 : f32
    %7 = vector.broadcast %cst_4 : f32 to vector<128x16xf32>
    %8 = arith.maximumf %6, %7 : vector<128x16xf32>
    %9 = arith.truncf %8 : vector<128x16xf32> to vector<128x16xbf16>
    %c144 = arith.constant 144 : index
    %c0_5 = arith.constant 0 : index
    %10 = vector.load %arg2[%c144, %c0_5] : memref<344x128xf32, #tpu.memory_space<vmem>>, vector<8x8xf32>
    %c152 = arith.constant 152 : index
    %c0_6 = arith.constant 0 : index
    %11 = vector.load %arg2[%c152, %c0_6] : memref<344x128xf32, #tpu.memory_space<vmem>>, vector<8x8xf32>
    %c160 = arith.constant 160 : index
    %c0_7 = arith.constant 0 : index
    %12 = vector.load %arg2[%c160, %c0_7] : memref<344x128xf32, #tpu.memory_space<vmem>>, vector<8x8xf32>
    %c168 = arith.constant 168 : index
    %c0_8 = arith.constant 0 : index
    %13 = vector.load %arg2[%c168, %c0_8] : memref<344x128xf32, #tpu.memory_space<vmem>>, vector<8x8xf32>
    %c176 = arith.constant 176 : index
    %c0_9 = arith.constant 0 : index
    %14 = vector.load %arg2[%c176, %c0_9] : memref<344x128xf32, #tpu.memory_space<vmem>>, vector<8x8xf32>
    %c184 = arith.constant 184 : index
    %c0_10 = arith.constant 0 : index
    %15 = vector.load %arg2[%c184, %c0_10] : memref<344x128xf32, #tpu.memory_space<vmem>>, vector<8x8xf32>
    %c192 = arith.constant 192 : index
    %c0_11 = arith.constant 0 : index
    %16 = vector.load %arg2[%c192, %c0_11] : memref<344x128xf32, #tpu.memory_space<vmem>>, vector<128x16xf32>
    %c320 = arith.constant 320 : index
    %c0_12 = arith.constant 0 : index
    %17 = vector.load %arg2[%c320, %c0_12] : memref<344x128xf32, #tpu.memory_space<vmem>>, vector<1x16xf32>
    %c321 = arith.constant 321 : index
    %c0_13 = arith.constant 0 : index
    %18 = vector.load %arg2[%c321, %c0_13] : memref<344x128xf32, #tpu.memory_space<vmem>>, vector<1x2xf32>
    %c328 = arith.constant 328 : index
    %c0_14 = arith.constant 0 : index
    %19 = vector.load %arg2[%c328, %c0_14] : memref<344x128xf32, #tpu.memory_space<vmem>>, vector<16x2xf32>
    %20 = tpu.iota {dimensions = array<i32: 0>} : vector<8x8xi32>
    %21 = tpu.iota {dimensions = array<i32: 1>} : vector<8x8xi32>
    %22 = arith.cmpi eq, %20, %21 : vector<8x8xi32>
    %23 = arith.extui %22 : vector<8x8xi1> to vector<8x8xi32>
    %24 = arith.sitofp %23 : vector<8x8xi32> to vector<8x8xf32>
    %25 = vector.shape_cast %24 : vector<8x8xf32> to vector<1x8x8xf32>
    %c0_15 = arith.constant 0 : index
    %c0_16 = arith.constant 0 : index
    %c0_17 = arith.constant 0 : index
    %c0_18 = arith.constant 0 : index
    %26 = vector.load %arg1[%c0_15, %c0_16, %c0_17, %c0_18] : memref<2x2x128x128xbf16, #tpu.memory_space<vmem>>, vector<1x2x128x128xbf16>
    %27 = vector.shape_cast %26 : vector<1x2x128x128xbf16> to vector<2x128x128xbf16>
    %28 = vector.shape_cast %27 : vector<2x128x128xbf16> to vector<256x128xbf16>
    %29 = vector.extract_strided_slice %9 {offsets = [0, 0], sizes = [128, 8], strides = [1, 1]} : vector<128x16xbf16> to vector<128x8xbf16>
    %cst_19 = arith.constant dense<0.000000e+00> : vector<256x8xf32>
    %30 = tpu.matmul %28, %29, %cst_19 {dimension_numbers = #tpu.dot_dimension_numbers<[1], [0], [0], [1], [0, 0, 1, 1], [], []>} : vector<256x128xbf16>, vector<128x8xbf16>, vector<256x8xf32> -> vector<256x8xf32>
    %31 = vector.shape_cast %30 : vector<256x8xf32> to vector<2x128x8xf32>
    %32 = vector.shape_cast %2 : vector<8x128xf32> to vector<1x8x128xf32>
    %33 = vector.shape_cast %32 : vector<1x8x128xf32> to vector<1x8x128xf32>
    %34 = vector.broadcast %33 : vector<1x8x128xf32> to vector<2x8x128xf32>
    %cst_20 = arith.constant dense<0.000000e+00> : vector<2x8x8xf32>
    %35 = tpu.matmul %34, %31, %cst_20 {dimension_numbers = #tpu.dot_dimension_numbers<[2], [1], [1], [2], [0, 0, 0, 1, 1, 2], [0], [0]>} : vector<2x8x128xf32>, vector<2x128x8xf32>, vector<2x8x8xf32> -> vector<2x8x8xf32>
    %36 = vector.shape_cast %35 : vector<2x8x8xf32> to vector<16x8xf32>
    %cst_21 = arith.constant dense<0.000000e+00> : vector<16x8xf32>
    %37 = tpu.matmul %36, %10, %cst_21 {dimension_numbers = #tpu.dot_dimension_numbers<[1], [0], [0], [1], [0, 0, 1, 1], [], []>} : vector<16x8xf32>, vector<8x8xf32>, vector<16x8xf32> -> vector<16x8xf32>
    %38 = vector.shape_cast %37 : vector<16x8xf32> to vector<2x8x8xf32>
    %cst_22 = arith.constant 8.500000e-01 : f32
    %39 = vector.broadcast %cst_22 : f32 to vector<2x8x8xf32>
    %40 = arith.mulf %39, %38 : vector<2x8x8xf32>
    %41 = vector.broadcast %25 : vector<1x8x8xf32> to vector<2x8x8xf32>
    %42 = arith.addf %41, %40 : vector<2x8x8xf32>
    %cst_23 = arith.constant 0.000000e+00 : f32
    %43 = vector.broadcast %cst_23 : f32 to vector<2x8x8xf32>
    %44 = arith.maximumf %42, %43 : vector<2x8x8xf32>
    %cst_24 = arith.constant dense<0.000000e+00> : vector<2x8xf32>
    %45 = vector.multi_reduction <add>, %44, %cst_24 [1] : vector<2x8x8xf32> to vector<2x8xf32>
    %46 = vector.shape_cast %45 : vector<2x8xf32> to vector<2x1x8xf32>
    %cst_25 = arith.constant 8.000000e+00 : f32
    %47 = vector.broadcast %cst_25 : f32 to vector<2x1x8xf32>
    %48 = arith.divf %46, %47 : vector<2x1x8xf32>
    %cst_26 = arith.constant 9.99999997E-7 : f32
    %49 = vector.broadcast %cst_26 : f32 to vector<2x1x8xf32>
    %50 = arith.addf %48, %49 : vector<2x1x8xf32>
    %51 = vector.broadcast %50 : vector<2x1x8xf32> to vector<2x8x8xf32>
    %52 = arith.divf %44, %51 : vector<2x8x8xf32>
    %cst_27 = arith.constant 0.000000e+00 : f32
    %53 = vector.broadcast %cst_27 : f32 to vector<2x8x8xf32>
    %54 = arith.maximumf %52, %53 : vector<2x8x8xf32>
    %55 = math.absf %52 : vector<2x8x8xf32>
    %cst_28 = arith.constant 0.000000e+00 : f32
    %56 = vector.broadcast %cst_28 : f32 to vector<2x8x8xf32>
    %57 = arith.subf %56, %55 : vector<2x8x8xf32>
    %58 = math.exp %57 : vector<2x8x8xf32>
    %cst_29 = arith.constant 1.000000e+00 : f32
    %59 = vector.broadcast %cst_29 : f32 to vector<2x8x8xf32>
    %60 = arith.addf %59, %58 : vector<2x8x8xf32>
    %61 = math.log %60 : vector<2x8x8xf32>
    %62 = arith.addf %54, %61 : vector<2x8x8xf32>
    %63 = vector.shape_cast %62 : vector<2x8x8xf32> to vector<16x8xf32>
    %cst_30 = arith.constant dense<0.000000e+00> : vector<16x8xf32>
    %64 = tpu.matmul %63, %11, %cst_30 {dimension_numbers = #tpu.dot_dimension_numbers<[1], [0], [0], [1], [0, 0, 1, 1], [], []>} : vector<16x8xf32>, vector<8x8xf32>, vector<16x8xf32> -> vector<16x8xf32>
    %65 = vector.shape_cast %64 : vector<16x8xf32> to vector<2x8x8xf32>
    %cst_31 = arith.constant dense<0.000000e+00> : vector<2x8x8xf32>
    %66 = tpu.matmul %35, %65, %cst_31 {dimension_numbers = #tpu.dot_dimension_numbers<[2], [1], [1], [2], [0, 0, 0, 1, 1, 2], [0], [0]>} : vector<2x8x8xf32>, vector<2x8x8xf32>, vector<2x8x8xf32> -> vector<2x8x8xf32>
    %cst_32 = arith.constant 8.500000e-01 : f32
    %67 = vector.broadcast %cst_32 : f32 to vector<2x8x8xf32>
    %68 = arith.mulf %67, %66 : vector<2x8x8xf32>
    %69 = vector.broadcast %25 : vector<1x8x8xf32> to vector<2x8x8xf32>
    %70 = arith.addf %69, %68 : vector<2x8x8xf32>
    %cst_33 = arith.constant 0.000000e+00 : f32
    %71 = vector.broadcast %cst_33 : f32 to vector<2x8x8xf32>
    %72 = arith.maximumf %70, %71 : vector<2x8x8xf32>
    %cst_34 = arith.constant dense<0.000000e+00> : vector<2x8xf32>
    %73 = vector.multi_reduction <add>, %72, %cst_34 [1] : vector<2x8x8xf32> to vector<2x8xf32>
    %74 = vector.shape_cast %73 : vector<2x8xf32> to vector<2x1x8xf32>
    %cst_35 = arith.constant 8.000000e+00 : f32
    %75 = vector.broadcast %cst_35 : f32 to vector<2x1x8xf32>
    %76 = arith.divf %74, %75 : vector<2x1x8xf32>
    %cst_36 = arith.constant 9.99999997E-7 : f32
    %77 = vector.broadcast %cst_36 : f32 to vector<2x1x8xf32>
    %78 = arith.addf %76, %77 : vector<2x1x8xf32>
    %79 = vector.broadcast %78 : vector<2x1x8xf32> to vector<2x8x8xf32>
    %80 = arith.divf %72, %79 : vector<2x8x8xf32>
    %cst_37 = arith.constant 0.000000e+00 : f32
    %81 = vector.broadcast %cst_37 : f32 to vector<2x8x8xf32>
    %82 = arith.maximumf %80, %81 : vector<2x8x8xf32>
    %83 = math.absf %80 : vector<2x8x8xf32>
    %cst_38 = arith.constant 0.000000e+00 : f32
    %84 = vector.broadcast %cst_38 : f32 to vector<2x8x8xf32>
    %85 = arith.subf %84, %83 : vector<2x8x8xf32>
    %86 = math.exp %85 : vector<2x8x8xf32>
    %cst_39 = arith.constant 1.000000e+00 : f32
    %87 = vector.broadcast %cst_39 : f32 to vector<2x8x8xf32>
    %88 = arith.addf %87, %86 : vector<2x8x8xf32>
    %89 = math.log %88 : vector<2x8x8xf32>
    %90 = arith.addf %82, %89 : vector<2x8x8xf32>
    %91 = vector.shape_cast %90 : vector<2x8x8xf32> to vector<16x8xf32>
    %cst_40 = arith.constant dense<0.000000e+00> : vector<16x8xf32>
    %92 = tpu.matmul %91, %12, %cst_40 {dimension_numbers = #tpu.dot_dimension_numbers<[1], [0], [0], [1], [0, 0, 1, 1], [], []>} : vector<16x8xf32>, vector<8x8xf32>, vector<16x8xf32> -> vector<16x8xf32>
    %93 = vector.shape_cast %92 : vector<16x8xf32> to vector<2x8x8xf32>
    %cst_41 = arith.constant dense<0.000000e+00> : vector<2x8x8xf32>
    %94 = tpu.matmul %35, %93, %cst_41 {dimension_numbers = #tpu.dot_dimension_numbers<[2], [1], [1], [2], [0, 0, 0, 1, 1, 2], [0], [0]>} : vector<2x8x8xf32>, vector<2x8x8xf32>, vector<2x8x8xf32> -> vector<2x8x8xf32>
    %cst_42 = arith.constant 8.500000e-01 : f32
    %95 = vector.broadcast %cst_42 : f32 to vector<2x8x8xf32>
    %96 = arith.mulf %95, %94 : vector<2x8x8xf32>
    %97 = vector.broadcast %25 : vector<1x8x8xf32> to vector<2x8x8xf32>
    %98 = arith.addf %97, %96 : vector<2x8x8xf32>
    %cst_43 = arith.constant 0.000000e+00 : f32
    %99 = vector.broadcast %cst_43 : f32 to vector<2x8x8xf32>
    %100 = arith.maximumf %98, %99 : vector<2x8x8xf32>
    %cst_44 = arith.constant dense<0.000000e+00> : vector<2x8xf32>
    %101 = vector.multi_reduction <add>, %100, %cst_44 [1] : vector<2x8x8xf32> to vector<2x8xf32>
    %102 = vector.shape_cast %101 : vector<2x8xf32> to vector<2x1x8xf32>
    %cst_45 = arith.constant 8.000000e+00 : f32
    %103 = vector.broadcast %cst_45 : f32 to vector<2x1x8xf32>
    %104 = arith.divf %102, %103 : vector<2x1x8xf32>
    %cst_46 = arith.constant 9.99999997E-7 : f32
    %105 = vector.broadcast %cst_46 : f32 to vector<2x1x8xf32>
    %106 = arith.addf %104, %105 : vector<2x1x8xf32>
    %107 = vector.broadcast %106 : vector<2x1x8xf32> to vector<2x8x8xf32>
    %108 = arith.divf %100, %107 : vector<2x8x8xf32>
    %cst_47 = arith.constant 0.000000e+00 : f32
    %109 = vector.broadcast %cst_47 : f32 to vector<2x8x8xf32>
    %110 = arith.maximumf %108, %109 : vector<2x8x8xf32>
    %111 = math.absf %108 : vector<2x8x8xf32>
    %cst_48 = arith.constant 0.000000e+00 : f32
    %112 = vector.broadcast %cst_48 : f32 to vector<2x8x8xf32>
    %113 = arith.subf %112, %111 : vector<2x8x8xf32>
    %114 = math.exp %113 : vector<2x8x8xf32>
    %cst_49 = arith.constant 1.000000e+00 : f32
    %115 = vector.broadcast %cst_49 : f32 to vector<2x8x8xf32>
    %116 = arith.addf %115, %114 : vector<2x8x8xf32>
    %117 = math.log %116 : vector<2x8x8xf32>
    %118 = arith.addf %110, %117 : vector<2x8x8xf32>
    %c1 = arith.constant 1 : index
    %c0_50 = arith.constant 0 : index
    %c0_51 = arith.constant 0 : index
    %c0_52 = arith.constant 0 : index
    %119 = vector.load %arg1[%c1, %c0_50, %c0_51, %c0_52] : memref<2x2x128x128xbf16, #tpu.memory_space<vmem>>, vector<1x2x128x128xbf16>
    %120 = vector.shape_cast %119 : vector<1x2x128x128xbf16> to vector<2x128x128xbf16>
    %121 = vector.shape_cast %120 : vector<2x128x128xbf16> to vector<256x128xbf16>
    %122 = vector.extract_strided_slice %9 {offsets = [0, 8], sizes = [128, 8], strides = [1, 1]} : vector<128x16xbf16> to vector<128x8xbf16>
    %cst_53 = arith.constant dense<0.000000e+00> : vector<256x8xf32>
    %123 = tpu.matmul %121, %122, %cst_53 {dimension_numbers = #tpu.dot_dimension_numbers<[1], [0], [0], [1], [0, 0, 1, 1], [], []>} : vector<256x128xbf16>, vector<128x8xbf16>, vector<256x8xf32> -> vector<256x8xf32>
    %124 = vector.shape_cast %123 : vector<256x8xf32> to vector<2x128x8xf32>
    %125 = vector.shape_cast %5 : vector<8x128xf32> to vector<1x8x128xf32>
    %126 = vector.shape_cast %125 : vector<1x8x128xf32> to vector<1x8x128xf32>
    %127 = vector.broadcast %126 : vector<1x8x128xf32> to vector<2x8x128xf32>
    %cst_54 = arith.constant dense<0.000000e+00> : vector<2x8x8xf32>
    %128 = tpu.matmul %127, %124, %cst_54 {dimension_numbers = #tpu.dot_dimension_numbers<[2], [1], [1], [2], [0, 0, 0, 1, 1, 2], [0], [0]>} : vector<2x8x128xf32>, vector<2x128x8xf32>, vector<2x8x8xf32> -> vector<2x8x8xf32>
    %129 = vector.shape_cast %128 : vector<2x8x8xf32> to vector<16x8xf32>
    %cst_55 = arith.constant dense<0.000000e+00> : vector<16x8xf32>
    %130 = tpu.matmul %129, %13, %cst_55 {dimension_numbers = #tpu.dot_dimension_numbers<[1], [0], [0], [1], [0, 0, 1, 1], [], []>} : vector<16x8xf32>, vector<8x8xf32>, vector<16x8xf32> -> vector<16x8xf32>
    %131 = vector.shape_cast %130 : vector<16x8xf32> to vector<2x8x8xf32>
    %cst_56 = arith.constant 8.500000e-01 : f32
    %132 = vector.broadcast %cst_56 : f32 to vector<2x8x8xf32>
    %133 = arith.mulf %132, %131 : vector<2x8x8xf32>
    %134 = vector.broadcast %25 : vector<1x8x8xf32> to vector<2x8x8xf32>
    %135 = arith.addf %134, %133 : vector<2x8x8xf32>
    %cst_57 = arith.constant 0.000000e+00 : f32
    %136 = vector.broadcast %cst_57 : f32 to vector<2x8x8xf32>
    %137 = arith.maximumf %135, %136 : vector<2x8x8xf32>
    %cst_58 = arith.constant dense<0.000000e+00> : vector<2x8xf32>
    %138 = vector.multi_reduction <add>, %137, %cst_58 [1] : vector<2x8x8xf32> to vector<2x8xf32>
    %139 = vector.shape_cast %138 : vector<2x8xf32> to vector<2x1x8xf32>
    %cst_59 = arith.constant 8.000000e+00 : f32
    %140 = vector.broadcast %cst_59 : f32 to vector<2x1x8xf32>
    %141 = arith.divf %139, %140 : vector<2x1x8xf32>
    %cst_60 = arith.constant 9.99999997E-7 : f32
    %142 = vector.broadcast %cst_60 : f32 to vector<2x1x8xf32>
    %143 = arith.addf %141, %142 : vector<2x1x8xf32>
    %144 = vector.broadcast %143 : vector<2x1x8xf32> to vector<2x8x8xf32>
    %145 = arith.divf %137, %144 : vector<2x8x8xf32>
    %cst_61 = arith.constant 0.000000e+00 : f32
    %146 = vector.broadcast %cst_61 : f32 to vector<2x8x8xf32>
    %147 = arith.maximumf %145, %146 : vector<2x8x8xf32>
    %148 = math.absf %145 : vector<2x8x8xf32>
    %cst_62 = arith.constant 0.000000e+00 : f32
    %149 = vector.broadcast %cst_62 : f32 to vector<2x8x8xf32>
    %150 = arith.subf %149, %148 : vector<2x8x8xf32>
    %151 = math.exp %150 : vector<2x8x8xf32>
    %cst_63 = arith.constant 1.000000e+00 : f32
    %152 = vector.broadcast %cst_63 : f32 to vector<2x8x8xf32>
    %153 = arith.addf %152, %151 : vector<2x8x8xf32>
    %154 = math.log %153 : vector<2x8x8xf32>
    %155 = arith.addf %147, %154 : vector<2x8x8xf32>
    %156 = vector.shape_cast %155 : vector<2x8x8xf32> to vector<16x8xf32>
    %cst_64 = arith.constant dense<0.000000e+00> : vector<16x8xf32>
    %157 = tpu.matmul %156, %14, %cst_64 {dimension_numbers = #tpu.dot_dimension_numbers<[1], [0], [0], [1], [0, 0, 1, 1], [], []>} : vector<16x8xf32>, vector<8x8xf32>, vector<16x8xf32> -> vector<16x8xf32>
    %158 = vector.shape_cast %157 : vector<16x8xf32> to vector<2x8x8xf32>
    %cst_65 = arith.constant dense<0.000000e+00> : vector<2x8x8xf32>
    %159 = tpu.matmul %128, %158, %cst_65 {dimension_numbers = #tpu.dot_dimension_numbers<[2], [1], [1], [2], [0, 0, 0, 1, 1, 2], [0], [0]>} : vector<2x8x8xf32>, vector<2x8x8xf32>, vector<2x8x8xf32> -> vector<2x8x8xf32>
    %cst_66 = arith.constant 8.500000e-01 : f32
    %160 = vector.broadcast %cst_66 : f32 to vector<2x8x8xf32>
    %161 = arith.mulf %160, %159 : vector<2x8x8xf32>
    %162 = vector.broadcast %25 : vector<1x8x8xf32> to vector<2x8x8xf32>
    %163 = arith.addf %162, %161 : vector<2x8x8xf32>
    %cst_67 = arith.constant 0.000000e+00 : f32
    %164 = vector.broadcast %cst_67 : f32 to vector<2x8x8xf32>
    %165 = arith.maximumf %163, %164 : vector<2x8x8xf32>
    %cst_68 = arith.constant dense<0.000000e+00> : vector<2x8xf32>
    %166 = vector.multi_reduction <add>, %165, %cst_68 [1] : vector<2x8x8xf32> to vector<2x8xf32>
    %167 = vector.shape_cast %166 : vector<2x8xf32> to vector<2x1x8xf32>
    %cst_69 = arith.constant 8.000000e+00 : f32
    %168 = vector.broadcast %cst_69 : f32 to vector<2x1x8xf32>
    %169 = arith.divf %167, %168 : vector<2x1x8xf32>
    %cst_70 = arith.constant 9.99999997E-7 : f32
    %170 = vector.broadcast %cst_70 : f32 to vector<2x1x8xf32>
    %171 = arith.addf %169, %170 : vector<2x1x8xf32>
    %172 = vector.broadcast %171 : vector<2x1x8xf32> to vector<2x8x8xf32>
    %173 = arith.divf %165, %172 : vector<2x8x8xf32>
    %cst_71 = arith.constant 0.000000e+00 : f32
    %174 = vector.broadcast %cst_71 : f32 to vector<2x8x8xf32>
    %175 = arith.maximumf %173, %174 : vector<2x8x8xf32>
    %176 = math.absf %173 : vector<2x8x8xf32>
    %cst_72 = arith.constant 0.000000e+00 : f32
    %177 = vector.broadcast %cst_72 : f32 to vector<2x8x8xf32>
    %178 = arith.subf %177, %176 : vector<2x8x8xf32>
    %179 = math.exp %178 : vector<2x8x8xf32>
    %cst_73 = arith.constant 1.000000e+00 : f32
    %180 = vector.broadcast %cst_73 : f32 to vector<2x8x8xf32>
    %181 = arith.addf %180, %179 : vector<2x8x8xf32>
    %182 = math.log %181 : vector<2x8x8xf32>
    %183 = arith.addf %175, %182 : vector<2x8x8xf32>
    %184 = vector.shape_cast %183 : vector<2x8x8xf32> to vector<16x8xf32>
    %cst_74 = arith.constant dense<0.000000e+00> : vector<16x8xf32>
    %185 = tpu.matmul %184, %15, %cst_74 {dimension_numbers = #tpu.dot_dimension_numbers<[1], [0], [0], [1], [0, 0, 1, 1], [], []>} : vector<16x8xf32>, vector<8x8xf32>, vector<16x8xf32> -> vector<16x8xf32>
    %186 = vector.shape_cast %185 : vector<16x8xf32> to vector<2x8x8xf32>
    %cst_75 = arith.constant dense<0.000000e+00> : vector<2x8x8xf32>
    %187 = tpu.matmul %128, %186, %cst_75 {dimension_numbers = #tpu.dot_dimension_numbers<[2], [1], [1], [2], [0, 0, 0, 1, 1, 2], [0], [0]>} : vector<2x8x8xf32>, vector<2x8x8xf32>, vector<2x8x8xf32> -> vector<2x8x8xf32>
    %cst_76 = arith.constant 8.500000e-01 : f32
    %188 = vector.broadcast %cst_76 : f32 to vector<2x8x8xf32>
    %189 = arith.mulf %188, %187 : vector<2x8x8xf32>
    %190 = vector.broadcast %25 : vector<1x8x8xf32> to vector<2x8x8xf32>
    %191 = arith.addf %190, %189 : vector<2x8x8xf32>
    %cst_77 = arith.constant 0.000000e+00 : f32
    %192 = vector.broadcast %cst_77 : f32 to vector<2x8x8xf32>
    %193 = arith.maximumf %191, %192 : vector<2x8x8xf32>
    %cst_78 = arith.constant dense<0.000000e+00> : vector<2x8xf32>
    %194 = vector.multi_reduction <add>, %193, %cst_78 [1] : vector<2x8x8xf32> to vector<2x8xf32>
    %195 = vector.shape_cast %194 : vector<2x8xf32> to vector<2x1x8xf32>
    %cst_79 = arith.constant 8.000000e+00 : f32
    %196 = vector.broadcast %cst_79 : f32 to vector<2x1x8xf32>
    %197 = arith.divf %195, %196 : vector<2x1x8xf32>
    %cst_80 = arith.constant 9.99999997E-7 : f32
    %198 = vector.broadcast %cst_80 : f32 to vector<2x1x8xf32>
    %199 = arith.addf %197, %198 : vector<2x1x8xf32>
    %200 = vector.broadcast %199 : vector<2x1x8xf32> to vector<2x8x8xf32>
    %201 = arith.divf %193, %200 : vector<2x8x8xf32>
    %cst_81 = arith.constant 0.000000e+00 : f32
    %202 = vector.broadcast %cst_81 : f32 to vector<2x8x8xf32>
    %203 = arith.maximumf %201, %202 : vector<2x8x8xf32>
    %204 = math.absf %201 : vector<2x8x8xf32>
    %cst_82 = arith.constant 0.000000e+00 : f32
    %205 = vector.broadcast %cst_82 : f32 to vector<2x8x8xf32>
    %206 = arith.subf %205, %204 : vector<2x8x8xf32>
    %207 = math.exp %206 : vector<2x8x8xf32>
    %cst_83 = arith.constant 1.000000e+00 : f32
    %208 = vector.broadcast %cst_83 : f32 to vector<2x8x8xf32>
    %209 = arith.addf %208, %207 : vector<2x8x8xf32>
    %210 = math.log %209 : vector<2x8x8xf32>
    %211 = arith.addf %203, %210 : vector<2x8x8xf32>
    %212 = tpu.concatenate %118, %211 in 2 : vector<2x8x8xf32>, vector<2x8x8xf32> -> vector<2x8x16xf32>
    %213 = vector.extract_strided_slice %212 {offsets = [0, 0, 0], sizes = [2, 1, 16], strides = [1, 1, 1]} : vector<2x8x16xf32> to vector<2x1x16xf32>
    %214 = vector.extract_strided_slice %212 {offsets = [0, 1, 0], sizes = [2, 1, 16], strides = [1, 1, 1]} : vector<2x8x16xf32> to vector<2x1x16xf32>
    %215 = vector.extract_strided_slice %212 {offsets = [0, 2, 0], sizes = [2, 1, 16], strides = [1, 1, 1]} : vector<2x8x16xf32> to vector<2x1x16xf32>
    %216 = vector.extract_strided_slice %212 {offsets = [0, 3, 0], sizes = [2, 1, 16], strides = [1, 1, 1]} : vector<2x8x16xf32> to vector<2x1x16xf32>
    %217 = vector.extract_strided_slice %212 {offsets = [0, 4, 0], sizes = [2, 1, 16], strides = [1, 1, 1]} : vector<2x8x16xf32> to vector<2x1x16xf32>
    %218 = vector.extract_strided_slice %212 {offsets = [0, 5, 0], sizes = [2, 1, 16], strides = [1, 1, 1]} : vector<2x8x16xf32> to vector<2x1x16xf32>
    %219 = vector.extract_strided_slice %212 {offsets = [0, 6, 0], sizes = [2, 1, 16], strides = [1, 1, 1]} : vector<2x8x16xf32> to vector<2x1x16xf32>
    %220 = vector.extract_strided_slice %212 {offsets = [0, 7, 0], sizes = [2, 1, 16], strides = [1, 1, 1]} : vector<2x8x16xf32> to vector<2x1x16xf32>
    %221 = tpu.concatenate %213, %214, %215, %216, %217, %218, %219, %220 in 2 : vector<2x1x16xf32>, vector<2x1x16xf32>, vector<2x1x16xf32>, vector<2x1x16xf32>, vector<2x1x16xf32>, vector<2x1x16xf32>, vector<2x1x16xf32>, vector<2x1x16xf32> -> vector<2x1x128xf32>
    %222 = vector.shape_cast %16 : vector<128x16xf32> to vector<1x128x16xf32>
    %223 = vector.shape_cast %222 : vector<1x128x16xf32> to vector<1x128x16xf32>
    %224 = vector.broadcast %223 : vector<1x128x16xf32> to vector<2x128x16xf32>
    %cst_84 = arith.constant dense<0.000000e+00> : vector<2x1x16xf32>
    %225 = tpu.matmul %221, %224, %cst_84 {dimension_numbers = #tpu.dot_dimension_numbers<[2], [1], [1], [2], [0, 0, 0, 1, 1, 2], [0], [0]>} : vector<2x1x128xf32>, vector<2x128x16xf32>, vector<2x1x16xf32> -> vector<2x1x16xf32>
    %226 = vector.shape_cast %17 : vector<1x16xf32> to vector<1x1x16xf32>
    %227 = vector.broadcast %226 : vector<1x1x16xf32> to vector<2x1x16xf32>
    %228 = arith.addf %225, %227 : vector<2x1x16xf32>
    %229 = vector.shape_cast %19 : vector<16x2xf32> to vector<1x16x2xf32>
    %230 = vector.shape_cast %229 : vector<1x16x2xf32> to vector<1x16x2xf32>
    %231 = vector.broadcast %230 : vector<1x16x2xf32> to vector<2x16x2xf32>
    %cst_85 = arith.constant dense<0.000000e+00> : vector<2x1x2xf32>
    %232 = tpu.matmul %228, %231, %cst_85 {dimension_numbers = #tpu.dot_dimension_numbers<[2], [1], [1], [2], [0, 0, 0, 1, 1, 2], [0], [0]>} : vector<2x1x16xf32>, vector<2x16x2xf32>, vector<2x1x2xf32> -> vector<2x1x2xf32>
    %233 = vector.shape_cast %18 : vector<1x2xf32> to vector<1x1x2xf32>
    %234 = vector.broadcast %233 : vector<1x1x2xf32> to vector<2x1x2xf32>
    %235 = arith.addf %232, %234 : vector<2x1x2xf32>
    %cst_86 = arith.constant dense<0xFF800000> : vector<2x1xf32>
    %236 = vector.multi_reduction <maximumf>, %235, %cst_86 [2] : vector<2x1x2xf32> to vector<2x1xf32>
    %237 = vector.shape_cast %236 : vector<2x1xf32> to vector<2x1x1xf32>
    %238 = vector.broadcast %237 : vector<2x1x1xf32> to vector<2x1x2xf32>
    %239 = arith.subf %235, %238 : vector<2x1x2xf32>
    %240 = math.exp %239 : vector<2x1x2xf32>
    %cst_87 = arith.constant dense<0.000000e+00> : vector<2x1xf32>
    %241 = vector.multi_reduction <add>, %240, %cst_87 [2] : vector<2x1x2xf32> to vector<2x1xf32>
    %242 = vector.shape_cast %241 : vector<2x1xf32> to vector<2x1x1xf32>
    %243 = vector.broadcast %242 : vector<2x1x1xf32> to vector<2x1x2xf32>
    %244 = arith.divf %240, %243 : vector<2x1x2xf32>
    %c0_88 = arith.constant 0 : index
    %c0_89 = arith.constant 0 : index
    %c0_90 = arith.constant 0 : index
    %245 = vector.load %arg3[%c0_88, %c0_89, %c0_90] : memref<2x1x2xf32, #tpu.memory_space<vmem>>, vector<2x1x2xf32>
    tpu.vector_store %arg3[%c0_88, %c0_89, %c0_90], %244 {strides = array<i32>} : memref<2x1x2xf32, #tpu.memory_space<vmem>>, vector<2x1x2xf32>,
    return
  }
  func.func @transform_0(%arg0: i32) -> (i32, i32, i32, i32) {
    %c0_i32 = arith.constant 0 : i32
    %c0_i32_0 = arith.constant 0 : i32
    %c0_i32_1 = arith.constant 0 : i32
    %c0_i32_2 = arith.constant 0 : i32
    return %c0_i32, %arg0, %c0_i32_0, %c0_i32_1 : i32, i32, i32, i32
  }
  func.func @transform_1(%arg0: i32) -> (i32, i32) {
    %c0_i32 = arith.constant 0 : i32
    %c0_i32_0 = arith.constant 0 : i32
    %c0_i32_1 = arith.constant 0 : i32
    return %c0_i32, %c0_i32_0 : i32, i32
  }
  func.func @transform_2(%arg0: i32) -> (i32, i32, i32) {
    %c0_i32 = arith.constant 0 : i32
    %c0_i32_0 = arith.constant 0 : i32
    %c0_i32_1 = arith.constant 0 : i32
    return %arg0, %c0_i32, %c0_i32_0 : i32, i32, i32
  }
}

</mosaic_0001>

<bundles_post_ra>
// kernel: tpu_custom_call.1
= control target key start
LH: loop header
LB: loop body
LE: loop exit
PB: predicated region body
PF: predicated region fallthrough
CT: control target
= control target key end

     0   :  { %7 = vsyncpa [#allocation3], 0  ;;  %s4531_s0 = inlined_call_operand.hbm [shape: bf16[2,4,128,128], index: 0, kind: input, shape index: {}]   ;;  %s4532_s1 = inlined_call_operand.hbm [shape: f32[344,128], index: 1, kind: input, shape index: {}]   ;;  %s4533_s2 = inlined_call_operand.vmem [shape: f32[4,1,2], index: 2, kind: output, shape index: {}]  }
   0x1   :  { %9 = vsyncpa [#allocation3 + $0x1], 0 }
   0x2   :  { %10 = vsyncpa [#allocation5], 0  ;;  %s4133_s9 = smov 0   ;;  %s4135_s10 = smov 0  }
   0x3   :  { %s4137_s11 = smov 0   ;;  %s4139_s12 = smov 0  }
   0x4 LB: > { %s2969_s13 = sadd.s32 4294967295, %s4095_s12   ;;  %s4153_s14 = sadd.s32 1, %s4095_s12   ;;  %s4095_s12 = sphi %s4139_s12, %s4551_s12   ;;  %s4091_s11 = sphi %s4137_s11, %s4550_s11   ;;  %s4087_s10 = sphi %s4135_s10, %s4549_s10   ;;  %s4083_s9 = sphi %s4133_s9, %s4548_s9  }
   0x5   : > { %s20_s15 = ssub.s32 %s4095_s12, %s4153_s14  ;;  %s23_s16 = sadd.s32 1, %s4091_s11 }
   0x6   : > { %p21_p0 = scmp.eq.s32.totalorder %s20_s15, 0  ;;  %p30_p1 = scmp.ne.s32.totalorder %s4091_s11, %s4087_s10 }
   0x7   : > { %p31_p2 = scmp.eq.s32.totalorder %s4095_s12, 0  ;;  %p36_p3 = scmp.ne.s32.totalorder %s4087_s10, %s4083_s9 }
   0x8   : > { %s4163_s17 = scalar_select %p21_p0, %s4091_s11, %s23_s16  }
   0x9   : > { %p4165_p4 = por %p31_p2, %p30_p1  ;;  %p4171_p5 = scmp.eq.s32.totalorder %s2969_s13, 0 }
   0xa   : > { %p2971_p6 = scmp.ge.s32.totalorder %s4095_s12, 1  ;;  %p94_p7 = scmp.lt.s32.totalorder %s4095_s12, 3 }
   0xb   : > { %s4539_s18 = scalar_select %p4165_p4, 1, 0 }
   0xc   : > { %s4540_s19 = scalar_select %p4171_p5, 1, 0 }
   0xd   : > { %p4179_p8 = por %p4171_p5, %p36_p3  ;;  %p4183_p9 = pnand %p2971_p6, %p94_p7 }
   0xe   : > { %s4097_s22 = smov [#allocation4]   ;;  %s4029_s27 = scalar_lea.hbm %s4532_s1, 5504 }
   0xf   : > { %s4541_s20 = scalar_select %p4179_p8, 1, 0 }
  0x10   : > { %s4542_s21 = scalar_select %p4183_p9, 1, 0 }
  0x11   : > { %s106_s23 = sshll.u32 %s4097_s22, 4  ;;  %p3818_p10 = pneg %p4183_p9  ;;  %s107_s23 = int_to_ptr.vmem [resolvable:$true] %s106_s23 }
  0x12   : > { %p4030_p12 = scmp.ne.s32.totalorder %s4532_s1, %s4029_s27  ;;  %p4036_p2 = scmp.lt.u32.totalorder %s4029_s27, %s4532_s1 }
  0x13   : > { %p4191_p11 = pnand %p3818_p10, %p4171_p5 }
  0x15   : > { %p4031_p13 = pneg %p4191_p11 }
  0x17   : > { %p4032_p0 = pnand %p4031_p13, %p4030_p12 }
  0x19   : > { %p4033_p1 = pneg %p4032_p0 }
  0x1b   : > { %p4038_p3 = pnand %p4036_p2, %p4033_p1 }
  0x1d   : > { %4041 = shalt.err (!%p4038_p3)
}
  0x1e   : > { %s4042_s4 = scalar_lea.vmem %s107_s23, 5504  ;;  %p4050_p5 = scmp.lt.s32.totalorder %s107_s23, %s107_s23 }
  0x1f   : > { %p4043_p6 = scmp.ne.s32.totalorder %s107_s23, %s4042_s4  ;;  %p4051_p8 = scmp.lt.s32.totalorder %s4042_s4, %s4042_s4 }
  0x21   : > { %p4045_p7 = pnand %p4043_p6, %p4031_p13  ;;  %p4052_p9 = por %p4051_p8, %p4050_p5 }
  0x23   : > { %p4046_p10 = pneg %p4045_p7 }
  0x25   : > { %p4053_p4 = pnand %p4052_p9, %p4046_p10 }
  0x27   : > { %4056 = shalt.err (!%p4053_p4)
}
  0x28   : > { %s4098_s5 = smov 128   ;;  %s4099_s6 = smov 8  }
  0x29   : > { %3821 = dma.hbm_to_vmem [thread:$0]  (!%p4191_p11), %s4532_s1, 5504, %s107_s23, [#allocation5], %s4098_s5, %s4098_s5, %s4099_s6  }
  0x2a   : > { %p2973_p12 = scmp.ge.s32.totalorder %s4095_s12, 2 }
  0x2c   : > { %116 = sbr.rel (%p2973_p12) target bundleno = 66 (0x42), region = 20 }
  0x33   : > { %s120_s9 = sand.u32 1, %s4091_s11   ;;  %s3074_s15 = sshll.u32 %s4095_s12, 11 }
  0x34   : > { %s2974_s16 = sshll.u32 %s120_s9, 8  ;;  %s131_s25 = scalar_lea.hbm %s4531_s0, %s3074_s15 }
  0x35   : > { %p4544_p4 = scmp.ne.s32.totalorder %s4539_s18, 0  ;;  %s124_s26 = scalar_lea.vmem [#allocation2], %s2974_s16 }
  0x36   : > { %s144_s27 = sshll.u32 %s124_s26, 4  ;;  %s4100_s29 = smov 4096   ;;  %s145_s27 = int_to_ptr.vmem [resolvable:$true] %s144_s27 }
  0x37   : > { %s3807_s23 = scalar_select %p4544_p4, [#allocation0], [#allocation8] }
  0x38   : > { %3808 = sst [smem:[#allocation7]] (%p4544_p4), %s4100_s29  ;;  %s4101_s30 = smov 2048  }
  0x39   : > { %s136_s28 = sld [smem:[%s3807_s23]]   ;;  %s4102_s3 = smov 32  }
  0x3a   : > { %3809 = sst [smem:[#allocation7 + $0x1]] (%p4544_p4), %s4101_s30  ;;  %s4103_s4 = smov 64  }
  0x3b   : > { %3810 = sst [smem:[#allocation7 + $0x2]] (%p4544_p4), %s4102_s3  ;;  %s4104_s6 = smov 4  }
  0x3c   : > { %3811 = sst [smem:[#allocation7 + $0x3]] (%p4544_p4), %s4103_s4  ;;  %s121_s8 = scalar_lea.sflag [#allocation3], %s120_s9 }
  0x3d   : > { %3812 = sst [smem:[#allocation7 + $0x4]] (%p4544_p4), %s4103_s4  ;;  %s4105_s15 = smov [#allocation6]  }
  0x3e   : > { %3813 = sst [smem:[#allocation7 + $0x5]] (%p4544_p4), %s4104_s6 }
  0x3f   : > { %s2978_s5 = sshll.u32 %s136_s28, 26 }
  0x40   : > { %s2979_s7 = sadd.s32 134217728, %s2978_s5 }
  0x41   : > { %3814 = dma.general (%p4544_p4), %s131_s25, 4096, %s145_s27, %s121_s8, %s4105_s15, [#allocation7], %s2979_s7, 0  }
  0x42 PF: > { %p4545_p5 = scmp.ne.s32.totalorder %s4542_s21, 0 }
  0x43   : > { %s171_s16 = sand.u32 (!%p4545_p5), 1, %s4087_s10   ;;  %p4546_p8 = scmp.ne.s32.totalorder (!%p4545_p5), %s4541_s20, 0 }
  0x44   : > { %169 = sbr.rel (%p4545_p5) target bundleno = 4164 (0x1044), region = 28  ;;  %s2981_s22 = sshll.u32 (!%p4545_p5), %s171_s16, 8 }
  0x45   : > { %s172_s24 = scalar_lea.sflag (!%p4545_p5), [#allocation3], %s171_s16  ;;  %s4236_s23 = scalar_lea.vmem (!%p4545_p5), [#allocation2], %s2981_s22 }
  0x4b   : > { %4074 = dma.done.wait (%p4546_p8), %s172_s24, 4096  }
  0x4c   : > { %4076 = vsyncadd (%p4546_p8), %s172_s24, 4294963200  ;;  %p4547_p9 = scmp.ne.s32.totalorder %s4540_s19, 0 }
  0x4e   : > { %4078 = dma.done.wait (%p4547_p9), [#allocation5], 5504  }
  0x4f   : > { %4080 = vsyncadd (%p4547_p9), [#allocation5], 4294961792  ;;  %v210_v0 = vld [vmem:[#allocation4 + $0x10] sm:$0xff]  ;;  %v211_v1 = vld [vmem:[#allocation4 + $0x18] sm:$0xff]  ;;  %v4106_v56 = vmov 0.0|0.0   ;;  %vm4107_vm0 = vmmov 0  }
  0x50   : > { %v212_v2 = vld [vmem:[#allocation4 + $0x20] sm:$0xff]  ;;  %v226_v3 = vmax.f32 %v210_v0, 0.0  ;;  %v227_v4 = vmax.f32 %v211_v1, 0.0  ;;  %v213_v5 = vld [vmem:[#allocation4 + $0x28] sm:$0xff]  ;;  %v214_v7 = vld [vmem:[#allocation4 + $0x30] sm:$0xff]  ;;  %3655 = vmatprep.subr.bf16.mxu1 %v4106_v56  ;;  %v4108_v57 = vmov 0.0  }
  0x51   : > { %v228_v6 = vmax.f32 %v212_v2, 0.0  ;;  %v215_v8 = vld [vmem:[#allocation4 + $0x38] sm:$0xff]  ;;  %v229_v9 = vmax.f32 %v213_v5, 0.0  ;;  %v230_v11 = vmax.f32 %v214_v7, 0.0  ;;  %v216_v13 = vld [vmem:[#allocation4 + $0x40] sm:$0xff]  ;;  %v217_v14 = vld [vmem:[#allocation4 + $0x48] sm:$0xff]  ;;  %3345 = vmatprep.mubr.msk.f32.mxu1 %vm4107_vm0, %v4108_v57 }
  0x52   : > { %v4246_v10 = vpack.c.bf16 %v227_v4, %v226_v3  ;;  %v231_v12 = vmax.f32 %v215_v8, 0.0  ;;  %v232_v16 = vmax.f32 %v216_v13, 0.0  ;;  %v233_v17 = vmax.f32 %v217_v14, 0.0  ;;  %v218_v18 = vld [vmem:[#allocation4 + $0x50] sm:$0xff]  ;;  %v3917_v19 = vld [vmem:[%s4236_s23] sm:$0xff]   ;;  %v219_v21 = vld [vmem:[#allocation4 + $0x58] sm:$0xff] }
  0x53   : > { %v4248_v15 = vpack.c.bf16 %v229_v9, %v228_v6  ;;  %3281 = vmatprep.mubr.bf16.mxu0 %v3917_v19  ;;  %v234_v22 = vmax.f32 %v218_v18, 0.0  ;;  %v235_v24 = vmax.f32 %v219_v21, 0.0  ;;  %v220_v25 = vld [vmem:[#allocation4 + $0x60] sm:$0xff]  ;;  %v221_v26 = vld [vmem:[#allocation4 + $0x68] sm:$0xff]  ;;  %v222_v30 = vld [vmem:[#allocation4 + $0x70] sm:$0xff]  ;;  %vm712_vm1 = vcmask 64512  }
  0x54   : > { %3265 = vmatprep.subr.bf16.mxu0 %v4246_v10  ;;  %v4254_v20 = vpack.c.bf16 %v231_v12, %v230_v11  ;;  %v4258_v23 = vpack.c.bf16 %v233_v17, %v232_v16  ;;  %v236_v27 = vmax.f32 %v220_v25, 0.0  ;;  %v237_v29 = vmax.f32 %v221_v26, 0.0  ;;  %v223_v31 = vld [vmem:[#allocation4 + $0x78] sm:$0xff]  ;;  %v224_v32 = vld [vmem:[#allocation4 + $0x80] sm:$0xff]  ;;  %v225_v33 = vld [vmem:[#allocation4 + $0x88] sm:$0xff]  ;;  %s4109_s18 = smov 120  }
  0x55   : > { %3266 = vmatpush3.bf16.msra.mxu0 %v4246_v10  ;;  %v4262_v28 = vpack.c.bf16 %v235_v24, %v234_v22  ;;  %v238_v35 = vmax.f32 %v222_v30, 0.0  ;;  %v239_v36 = vmax.f32 %v223_v31, 0.0  ;;  %v240_v37 = vmax.f32 %v224_v32, 0.0  ;;  %v3918_v41 = vld [vmem:[%s4236_s23 + $0x8] sm:$0xff]   ;;  %v3919_v42 = vld [vmem:[%s4236_s23 + $0x10] sm:$0xff]   ;;  %v3920_v43 = vld [vmem:[%s4236_s23 + $0x18] sm:$0xff]   ;;  %1512 = vrot.lane.b32.xlu0 %v4246_v10, %s4109_s18 }
  0x56   : > { %3267 = vmatprep.subr.bf16.mxu0 %v4248_v15  ;;  %v4266_v34 = vpack.c.bf16 %v237_v29, %v236_v27  ;;  %v241_v38 = vmax.f32 %v225_v33, 0.0  ;;  %v3921_v44 = vld [vmem:[%s4236_s23 + $0x20] sm:$0xff]   ;;  %v3922_v45 = vld [vmem:[%s4236_s23 + $0x28] sm:$0xff]   ;;  %v3923_v46 = vld [vmem:[%s4236_s23 + $0x30] sm:$0xff]   ;;  %1516 = vrot.lane.b32.xlu1 %v4254_v20, %s4109_s18  ;;  %s4110_s19 = smov 8   ;;  %s4111_s20 = smov 32  }
  0x57   : > { %v4270_v39 = vpack.c.bf16 %v239_v36, %v238_v35  ;;  %v3924_v47 = vld [vmem:[%s4236_s23 + $0x38] sm:$0xff]   ;;  %v3925_v48 = vld [vmem:[%s4236_s23 + $0x40] sm:$0xff]   ;;  %v3926_v49 = vld [vmem:[%s4236_s23 + $0x48] sm:$0xff]   ;;  %s4112_s21 = smov 16   ;;  %s4113_s9 = smov 64   ;;  %vm2566_vm3 = vcmask 130048  }
  0x58   : > { %v4274_v40 = vpack.c.bf16 %v241_v38, %v240_v37  ;;  %v3927_v50 = vld [vmem:[%s4236_s23 + $0x50] sm:$0xff]   ;;  %v3928_v51 = vld [vmem:[%s4236_s23 + $0x58] sm:$0xff]   ;;  %v3929_v52 = vld [vmem:[%s4236_s23 + $0x60] sm:$0xff]   ;;  %s4114_s25 = smov 48   ;;  %s4115_s26 = smov 96   ;;  %vm2569_vm4 = vcmask 261120  }
  0x59   : > { %3268 = vmatpush3.bf16.msra.mxu0 %v4248_v15  ;;  %v3930_v53 = vld [vmem:[%s4236_s23 + $0x68] sm:$0xff]   ;;  %v3931_v54 = vld [vmem:[%s4236_s23 + $0x70] sm:$0xff]   ;;  %v3932_v55 = vld [vmem:[%s4236_s23 + $0x78] sm:$0xff]   ;;  %1514 = vrot.lane.b32.xlu0 %v4248_v15, %s4109_s18  ;;  %s4116_s27 = smov 80   ;;  %s4117_s28 = smov 112   ;;  %vm2572_vm5 = vcmask 392192  }
  0x5a   : > { %3269 = vmatprep.subr.bf16.mxu0 %v4254_v20  ;;  %v206_v21 = vld [vmem:[#allocation4] sm:$0xff]  ;;  %1518 = vrot.lane.b32.xlu1 %v4258_v23, %s4109_s18  ;;  %vm2575_vm6 = vcmask 523264   ;;  %vm2578_vm7 = vcmask 654336   ;;  %vm2581_vm8 = vcmask 785408   ;;  %vm2584_vm9 = vcmask 916480   ;;  %s2983_s29 = sshll.u32 %s2969_s13, 1 }
  0x5b   : > { %v207_v25 = vmax.f32 %v206_v21, 0.0  ;;  %vm2873_vm10 = vcmask 8192   ;;  %p201_p11 = scmp.lt.s32.totalorder %s2983_s29, 3 }
  0x5d   : > { %3270 = vmatpush3.bf16.msra.mxu0 %v4254_v20  ;;  %1520 = vrot.lane.b32.xlu0 %v4262_v28, %s4109_s18  ;;  %s4553_s29 = smov (!%p201_p11, %s2983_s29), 3 }
  0x5e   : > { %3271 = vmatprep.subr.bf16.mxu0 %v4258_v23  ;;  %1522 = vrot.lane.b32.xlu1 %v4266_v34, %s4109_s18  ;;  %s203_s4 = scalar_lea.vmem %s4533_s2, %s4553_s29 }
  0x61   : > { %3272 = vmatpush3.bf16.msra.mxu0 %v4258_v23  ;;  %1524 = vrot.lane.b32.xlu0 %v4270_v39, %s4109_s18 }
  0x62   : > { %3273 = vmatprep.subr.bf16.mxu0 %v4262_v28  ;;  %1526 = vrot.lane.b32.xlu1 %v4274_v40, %s4109_s18 }
  0x65   : > { %3274 = vmatpush3.bf16.msra.mxu0 %v4262_v28 }
  0x66   : > { %3275 = vmatprep.subr.bf16.mxu0 %v4266_v34 }
  0x69   : > { %3276 = vmatpush3.bf16.msra.mxu0 %v4266_v34 }
  0x6a   : > { %3277 = vmatprep.subr.bf16.mxu0 %v4270_v39 }
  0x6d   : > { %3278 = vmatpush3.bf16.msra.mxu0 %v4270_v39 }
  0x6e   : > { %3279 = vmatprep.subr.bf16.mxu0 %v4274_v40 }
  0x71   : > { %3280 = vmatpush3.bf16.msra.mxu0 %v4274_v40 }
  0x74   : > { %3282 = vmatmul.mubr.bf16.vlgmr.msra.gmra.mrb[0].mxu0 %v3918_v41 }
  0x75   : > { %3285 = vmatprep.mubr.bf16.mxu0 %v3919_v42 }
  0x7c   : > { %3286 = vmatmul.mubr.bf16.gmra.mrb[4].mxu0 %v3920_v43 }
  0x7d   : > { %3289 = vmatprep.mubr.bf16.mxu0 %v3921_v44 }
  0x84   : > { %3290 = vmatmul.mubr.bf16.gmra.mrb[8].mxu0 %v3922_v45 }
  0x85   : > { %3293 = vmatprep.mubr.bf16.mxu0 %v3923_v46 }
  0x8c   : > { %3294 = vmatmul.mubr.bf16.gmra.mrb[12].mxu0 %v3924_v47 }
  0x8d   : > { %3297 = vmatprep.mubr.bf16.mxu0 %v3925_v48 }
  0x94   : > { %3298 = vmatmul.mubr.bf16.gmra.mrb[16].mxu0 %v3926_v49 }
  0x95   : > { %3301 = vmatprep.mubr.bf16.mxu0 %v3927_v50 }
  0x9c   : > { %3302 = vmatmul.mubr.bf16.gmra.mrb[20].mxu0 %v3928_v51 }
  0x9d   : > { %3305 = vmatprep.mubr.bf16.mxu0 %v3929_v52  ;;  %v250_v52 = vld [vmem:[#allocation4 + $0x90] sm:$0xff] }
  0xa4   : > { %3306 = vmatmul.mubr.bf16.gmra.mrb[24].mxu0 %v3930_v53 }
  0xa5   : > { %3309 = vmatprep.mubr.bf16.mxu0 %v3931_v54 }
  0xac   : > { %3310 = vmatmul.mubr.bf16.gmra.mrb[28].mxu0 %v3932_v55 }
  0xc7   : > { %v1513_v10 = vpop.permute.xlu0 %1512 }
  0xc8   : > { %3418 = vmatprep.subr.bf16.mxu0 %v1513_v10  ;;  %v1517_v20 = vpop.permute.xlu1 %1516 }
  0xc9   : > { %3419 = vmatpush3.bf16.msra.mxu0 %v1513_v10 }
  0xcb   : > { %v1515_v15 = vpop.permute.xlu0 %1514 }
  0xcc   : > { %3420 = vmatprep.subr.bf16.mxu0 %v1515_v15  ;;  %v1519_v23 = vpop.permute.xlu1 %1518 }
  0xcd   : > { %3421 = vmatpush3.bf16.msra.mxu0 %v1515_v15 }
  0xce   : > { %3422 = vmatprep.subr.bf16.mxu0 %v1517_v20 }
  0xcf   : > { %v1521_v28 = vpop.permute.xlu0 %1520 }
  0xd0   : > { %v1523_v34 = vpop.permute.xlu1 %1522 }
  0xd1   : > { %3423 = vmatpush3.bf16.msra.mxu0 %v1517_v20 }
  0xd2   : > { %3424 = vmatprep.subr.bf16.mxu0 %v1519_v23 }
  0xd3   : > { %v1525_v39 = vpop.permute.xlu0 %1524 }
  0xd4   : > { %v1527_v40 = vpop.permute.xlu1 %1526 }
  0xd5   : > { %3425 = vmatpush3.bf16.msra.mxu0 %v1519_v23 }
  0xd6   : > { %3426 = vmatprep.subr.bf16.mxu0 %v1521_v28 }
  0xd9   : > { %3427 = vmatpush3.bf16.msra.mxu0 %v1521_v28 }
  0xda   : > { %3428 = vmatprep.subr.bf16.mxu0 %v1523_v34 }
  0xdd   : > { %3429 = vmatpush3.bf16.msra.mxu0 %v1523_v34 }
  0xde   : > { %3430 = vmatprep.subr.bf16.mxu0 %v1525_v39 }
  0xe1   : > { %3431 = vmatpush3.bf16.msra.mxu0 %v1525_v39 }
  0xe2   : > { %3432 = vmatprep.subr.bf16.mxu0 %v1527_v40 }
  0xe5   : > { %3433 = vmatpush3.bf16.msra.mxu0 %v1527_v40 }
 0x147   : > { %v3283_v58 = vpop.f32.mrb[0].mxu0 }
 0x148   : > { %v445_v59 = vpop.f32.mrb[1].mxu0 }
 0x149   : > { %v3284_v60 = vpop.f32.mrb[2].mxu0 }
 0x14a   : > { %v3659_v61 = vpack.c.bf16 %v3284_v60, %v3283_v58  ;;  %v448_v62 = vpop.f32.mrb[3].mxu0  ;;  %v276_v60 = vlaneseq }
 0x14b   : > { %v3656_v63 = vpack.c.bf16 %v448_v62, %v445_v59  ;;  %v251_v59 = vld [vmem:[#allocation4 + $0x98] sm:$0xff] }
 0x14c   : > { %v279_v62 = vand.u32 127, %v276_v60 }
 0x14d   : > { %3657 = vmatpush3.bf16.msra.mxu1 %v3656_v63 }
 0x14e   : > { %3658 = vmatprep.subr.bf16.mxu1 %v4106_v56 }
 0x14f   : > { %v3287_v0 = vpop.f32.mrb[4].mxu0 }
 0x150   : > { %v461_v1 = vpop.f32.mrb[5].mxu0 }
 0x151   : > { %v3288_v2 = vpop.f32.mrb[6].mxu0  ;;  %3660 = vmatpush3.bf16.msra.mxu1 %v3659_v61  ;;  %v277_v61 = vshrl.u32 %v276_v60, 7 }
 0x152   : > { %v3665_v3 = vpack.c.bf16 %v3288_v2, %v3287_v0  ;;  %v464_v4 = vpop.f32.mrb[7].mxu0  ;;  %3661 = vmatprep.subr.bf16.mxu1 %v4106_v56 }
 0x153   : > { %v3662_v5 = vpack.c.bf16 %v464_v4, %v461_v1  ;;  %vm280_vm2 = vcmp.eq.s32.totalorder %v277_v61, %v279_v62  ;;  %v3933_v62 = vld [vmem:[%s4236_s23 + $0x80] sm:$0xff]  }
 0x154   : > { %v4324_v63 = vsel %vm280_vm2, 1.0, %v4108_v57  ;;  %3434 = vmatprep.mubr.bf16.mxu0 %v3933_v62 }
 0x155   : > { %3663 = vmatpush3.bf16.msra.mxu1 %v3662_v5 }
 0x156   : > { %3664 = vmatprep.subr.bf16.mxu1 %v4106_v56 }
 0x157   : > { %v3291_v6 = vpop.f32.mrb[8].mxu0 }
 0x158   : > { %v477_v7 = vpop.f32.mrb[9].mxu0 }
 0x159   : > { %v3292_v8 = vpop.f32.mrb[10].mxu0  ;;  %3666 = vmatpush3.bf16.msra.mxu1 %v3665_v3 }
 0x15a   : > { %v3671_v9 = vpack.c.bf16 %v3292_v8, %v3291_v6  ;;  %v480_v11 = vpop.f32.mrb[11].mxu0  ;;  %3667 = vmatprep.subr.bf16.mxu1 %v4106_v56 }
 0x15b   : > { %v3668_v12 = vpack.c.bf16 %v480_v11, %v477_v7 }
 0x15d   : > { %3669 = vmatpush3.bf16.msra.mxu1 %v3668_v12 }
 0x15e   : > { %3670 = vmatprep.subr.bf16.mxu1 %v4106_v56 }
 0x15f   : > { %v3295_v13 = vpop.f32.mrb[12].mxu0 }
 0x160   : > { %v493_v14 = vpop.f32.mrb[13].mxu0 }
 0x161   : > { %v3296_v16 = vpop.f32.mrb[14].mxu0  ;;  %3672 = vmatpush3.bf16.msra.mxu1 %v3671_v9 }
 0x162   : > { %v3677_v17 = vpack.c.bf16 %v3296_v16, %v3295_v13  ;;  %v496_v18 = vpop.f32.mrb[15].mxu0  ;;  %3673 = vmatprep.subr.bf16.mxu1 %v4106_v56 }
 0x163   : > { %v3674_v19 = vpack.c.bf16 %v496_v18, %v493_v14 }
 0x165   : > { %3675 = vmatpush3.bf16.msra.mxu1 %v3674_v19 }
 0x166   : > { %3676 = vmatprep.subr.bf16.mxu1 %v4106_v56 }
 0x167   : > { %v3299_v22 = vpop.f32.mrb[16].mxu0 }
 0x168   : > { %v509_v24 = vpop.f32.mrb[17].mxu0 }
 0x169   : > { %v3300_v26 = vpop.f32.mrb[18].mxu0  ;;  %3678 = vmatpush3.bf16.msra.mxu1 %v3677_v17 }
 0x16a   : > { %v3683_v27 = vpack.c.bf16 %v3300_v26, %v3299_v22  ;;  %v512_v29 = vpop.f32.mrb[19].mxu0  ;;  %3679 = vmatprep.subr.bf16.mxu1 %v4106_v56 }
 0x16b   : > { %v3680_v30 = vpack.c.bf16 %v512_v29, %v509_v24 }
 0x16c   : > { %3346 = vmatmul.mubr.f32.vlgmr.msra.gmra.mrb[0].mxu1 %v207_v25 }
 0x16d   : > { %3681 = vmatpush3.bf16.msra.mxu1 %v3680_v30  ;;  %3380 = vmatprep.mubr.msk.f32.mxu1 %vm4107_vm0, %v4108_v57 }
 0x16e   : > { %3682 = vmatprep.subr.bf16.mxu1 %v4106_v56 }
 0x16f   : > { %v3303_v31 = vpop.f32.mrb[20].mxu0 }
 0x170   : > { %v525_v32 = vpop.f32.mrb[21].mxu0 }
 0x171   : > { %v3304_v33 = vpop.f32.mrb[22].mxu0  ;;  %3684 = vmatpush3.bf16.msra.mxu1 %v3683_v27 }
 0x172   : > { %v3689_v35 = vpack.c.bf16 %v3304_v33, %v3303_v31  ;;  %v528_v36 = vpop.f32.mrb[23].mxu0  ;;  %3685 = vmatprep.subr.bf16.mxu1 %v4106_v56 }
 0x173   : > { %v3686_v37 = vpack.c.bf16 %v528_v36, %v525_v32 }
 0x175   : > { %3687 = vmatpush3.bf16.msra.mxu1 %v3686_v37 }
 0x176   : > { %3688 = vmatprep.subr.bf16.mxu1 %v4106_v56 }
 0x177   : > { %v3307_v38 = vpop.f32.mrb[24].mxu0 }
 0x178   : > { %v541_v41 = vpop.f32.mrb[25].mxu0 }
 0x179   : > { %v3308_v42 = vpop.f32.mrb[26].mxu0  ;;  %3690 = vmatpush3.bf16.msra.mxu1 %v3689_v35 }
 0x17a   : > { %v3695_v43 = vpack.c.bf16 %v3308_v42, %v3307_v38  ;;  %v544_v44 = vpop.f32.mrb[27].mxu0  ;;  %3691 = vmatprep.subr.bf16.mxu1 %v4106_v56 }
 0x17b   : > { %v3692_v45 = vpack.c.bf16 %v544_v44, %v541_v41 }
 0x17d   : > { %3693 = vmatpush3.bf16.msra.mxu1 %v3692_v45 }
 0x17e   : > { %3694 = vmatprep.subr.bf16.mxu1 %v4106_v56 }
 0x17f   : > { %v3311_v46 = vpop.f32.mrb[28].mxu0 }
 0x180   : > { %v557_v47 = vpop.f32.mrb[29].mxu0 }
 0x181   : > { %v3312_v48 = vpop.f32.mrb[30].mxu0  ;;  %3696 = vmatpush3.bf16.msra.mxu1 %v3695_v43 }
 0x182   : > { %v3701_v49 = vpack.c.bf16 %v3312_v48, %v3311_v46  ;;  %v560_v50 = vpop.f32.mrb[31].mxu0  ;;  %3697 = vmatprep.subr.bf16.mxu1 %v4106_v56 }
 0x183   : > { %v3698_v51 = vpack.c.bf16 %v560_v50, %v557_v47 }
 0x185   : > { %3699 = vmatpush3.bf16.msra.mxu1 %v3698_v51 }
 0x186   : > { %3700 = vmatprep.subr.bf16.mxu1 %v4106_v56 }
 0x189   : > { %3702 = vmatpush3.bf16.msra.mxu1 %v3701_v49 }
 0x18a   : > { %3383 = vmatprep.subr.mxu1 %v250_v52 }
 0x18c   : > { %3381 = vmatmul.mubr.f32.vlgmr.msra.gmra.mrb[2].mxu1 %v207_v25 }
 0x18d   : > { %3384 = vmatpush3.msra.mxu1 %v250_v52 }
 0x18e   : > { %3388 = vmatprep.subr.mxu1 %v251_v59 }
 0x23f   : > { %v4314_v53 = vpop.f32.mrb[0].mxu1 }
 0x240   : > { %v3347_v54 = vpop.f32.mrb[1].mxu1  ;;  %3385 = vmatprep.mubr.msk.f32.mxu1 %vm712_vm1, %v4314_v53 }
 0x25f   : > { %v4318_v55 = vpop.f32.mrb[2].mxu1 }
 0x260   : > { %v3382_v58 = vpop.f32.mrb[3].mxu1  ;;  %3386 = vmatmul.mubr.msk.f32.vlgmr.msra.gmra.mrb[4].mxu1 %vm712_vm1, %v4318_v55 }
 0x261   : > { %3389 = vmatpush3.msra.mxu1 %v251_v59 }
 0x262   : > { %3393 = vmatprep.subr.mxu1 %v4108_v57 }
 0x333   : > { %v3387_v0 = vpop.f32.mrb[4].mxu1 }
 0x334   : > { %v795_v1 = vmul.f32 0.85, %v3387_v0  ;;  %v785_v2 = vpop.f32.mrb[5].mxu1  ;;  %v3934_v0 = vld [vmem:[%s4236_s23 + $0x88] sm:$0xff]  }
 0x335   : > { %v794_v3 = vmul.f32 0.85, %v785_v2  ;;  %3435 = vmatmul.mubr.bf16.vlgmr.msra.gmra.mrb[32].mxu0 %v3934_v0  ;;  %v3935_v2 = vld [vmem:[%s4236_s23 + $0x90] sm:$0xff]  }
 0x336   : > { %v797_v4 = vadd.f32 %v4324_v63, %v795_v1  ;;  %v252_v1 = vld [vmem:[#allocation4 + $0xa0] sm:$0xff]  ;;  %3438 = vmatprep.mubr.bf16.mxu0 %v3935_v2 }
 0x337   : > { %v796_v5 = vadd.f32 %v4324_v63, %v794_v3  ;;  %v3936_v3 = vld [vmem:[%s4236_s23 + $0x98] sm:$0xff]  }
 0x338   : > { %v799_v6 = vmax.f32 %v797_v4, 0.0  ;;  %v3937_v4 = vld [vmem:[%s4236_s23 + $0xa0] sm:$0xff]  }
 0x339   : > { %v798_v7 = vmax.f32 %v796_v5, 0.0  ;;  %v3938_v5 = vld [vmem:[%s4236_s23 + $0xa8] sm:$0xff]  }
 0x33a   : > { %v807_v8 = vsel %vm712_vm1, %v799_v6, 0.0 }
 0x33b   : > { %v808_v9 = vrot.slane %v807_v8, 4  ;;  %v800_v11 = vsel %vm712_vm1, %v798_v7, 0.0 }
 0x33c   : > { %v801_v12 = vrot.slane %v800_v11, 4 }
 0x33d   : > { %v809_v13 = vadd.f32 %v808_v9, %v807_v8  ;;  %3439 = vmatmul.mubr.bf16.gmra.mrb[36].mxu0 %v3936_v3  ;;  %v3941_v8 = vld [vmem:[%s4236_s23 + $0xc0] sm:$0xff]   ;;  %v3942_v9 = vld [vmem:[%s4236_s23 + $0xc8] sm:$0xff]  }
 0x33e   : > { %v802_v14 = vadd.f32 %v801_v12, %v800_v11  ;;  %3442 = vmatprep.mubr.bf16.mxu0 %v3937_v4  ;;  %v3943_v11 = vld [vmem:[%s4236_s23 + $0xd0] sm:$0xff]   ;;  %v3944_v12 = vld [vmem:[%s4236_s23 + $0xd8] sm:$0xff]  }
 0x33f   : > { %v810_v16 = vrot.slane %v809_v13, 2 }
 0x340   : > { %v803_v17 = vrot.slane %v802_v14, 2 }
 0x341   : > { %v811_v18 = vadd.f32 %v810_v16, %v809_v13  ;;  %v3945_v13 = vld [vmem:[%s4236_s23 + $0xe0] sm:$0xff]   ;;  %v3947_v16 = vld [vmem:[%s4236_s23 + $0xf0] sm:$0xff]  }
 0x342   : > { %v804_v19 = vadd.f32 %v803_v17, %v802_v14  ;;  %v3946_v14 = vld [vmem:[%s4236_s23 + $0xe8] sm:$0xff]   ;;  %v3948_v17 = vld [vmem:[%s4236_s23 + $0xf8] sm:$0xff]  }
 0x343   : > { %v812_v21 = vrot.slane %v811_v18, 1 }
 0x344   : > { %v805_v22 = vrot.slane %v804_v19, 1 }
 0x345   : > { %v813_v24 = vadd.f32 %v812_v21, %v811_v18  ;;  %3443 = vmatmul.mubr.bf16.gmra.mrb[40].mxu0 %v3938_v5 }
 0x346   : > { %v806_v25 = vadd.f32 %v805_v22, %v804_v19 }
 0x347   : > { %v816_v26 = vmul.f32 0.125, %v813_v24 }
 0x348   : > { %v815_v27 = vmul.f32 0.125, %v806_v25 }
 0x349   : > { %v818_v29 = vadd.f32 1e-06, %v816_v26 }
 0x34a   : > { %v817_v30 = vadd.f32 1e-06, %v815_v27 }
 0x34b   : > { %3949 = vrcp.f32 %v818_v29 }
 0x34c   : > { %3951 = vrcp.f32 %v817_v30 }
 0x355   : > { %v3950_v31 = vpop.eup %3949 }
 0x356   : > { %v3952_v32 = vpop.eup %3951  ;;  %v822_v33 = vmul.f32 %v3950_v31, %v799_v6  ;;  %v3939_v6 = vld [vmem:[%s4236_s23 + $0xb0] sm:$0xff]  }
 0x357   : > { %v820_v35 = vmul.f32 %v3952_v32, %v798_v7  ;;  %3446 = vmatprep.mubr.bf16.mxu0 %v3939_v6  ;;  %v3940_v7 = vld [vmem:[%s4236_s23 + $0xb8] sm:$0xff]  }
 0x358   : > { %v826_v36 = vand.u32 2147483647, %v822_v33  ;;  %v824_v54 = vmax.f32 %v822_v33, 0.0  ;;  %3447 = vmatmul.mubr.bf16.gmra.mrb[44].mxu0 %v3940_v7 }
 0x359   : > { %v825_v37 = vand.u32 2147483647, %v820_v35  ;;  %v823_v51 = vmax.f32 %v820_v35, 0.0  ;;  %3450 = vmatprep.mubr.bf16.mxu0 %v3941_v8 }
 0x35a   : > { %v828_v38 = vsub.f32 0.0, %v826_v36 }
 0x35b   : > { %v827_v41 = vsub.f32 0.0, %v825_v37 }
 0x35c   : > { %v831_v42 = vmul.f32 1.442695, %v828_v38 }
 0x35d   : > { %v829_v43 = vmul.f32 1.442695, %v827_v41 }
 0x35e   : > { %3953 = vpow2.f32 %v831_v42 }
 0x35f   : > { %3955 = vpow2.f32 %v829_v43 }
 0x360   : > { %3451 = vmatmul.mubr.bf16.gmra.mrb[48].mxu0 %v3942_v9 }
 0x361   : > { %3454 = vmatprep.mubr.bf16.mxu0 %v3943_v11 }
 0x368   : > { %v3954_v44 = vpop.eup %3953  ;;  %3455 = vmatmul.mubr.bf16.gmra.mrb[52].mxu0 %v3944_v12 }
 0x369   : > { %v3956_v45 = vpop.eup %3955  ;;  %v834_v46 = vadd.f32 1.0, %v3954_v44  ;;  %3458 = vmatprep.mubr.bf16.mxu0 %v3945_v13 }
 0x36a   : > { %v833_v47 = vadd.f32 1.0, %v3956_v45 }
 0x36b   : > { %3957 = vlog2.f32 %v834_v46 }
 0x36c   : > { %3959 = vlog2.f32 %v833_v47 }
 0x370   : > { %3459 = vmatmul.mubr.bf16.gmra.mrb[56].mxu0 %v3946_v14 }
 0x371   : > { %3462 = vmatprep.mubr.bf16.mxu0 %v3947_v16 }
 0x375   : > { %v3958_v48 = vpop.eup %3957 }
 0x376   : > { %v3960_v49 = vpop.eup %3959  ;;  %v838_v50 = vmul.f32 0.6931472, %v3958_v48 }
 0x377   : > { %v836_v52 = vmul.f32 0.6931472, %v3960_v49 }
 0x378   : > { %v840_v59 = vadd.f32 %v838_v50, %v824_v54  ;;  %3463 = vmatmul.mubr.bf16.gmra.mrb[60].mxu0 %v3948_v17 }
 0x379   : > { %v839_v58 = vadd.f32 %v836_v52, %v823_v51 }
 0x37b   : > { %3390 = vmatprep.mubr.msk.f32.mxu1 %vm712_vm1, %v839_v58 }
 0x37c   : > { %3391 = vmatmul.mubr.msk.f32.vlgmr.msra.gmra.mrb[6].mxu1 %vm712_vm1, %v840_v59 }
 0x37d   : > { %3395 = vmatprep.mubr.msk.f32.mxu1 %vm4107_vm0, %v4108_v57 }
 0x408   : > { %v3436_v7 = vpop.f32.mrb[32].mxu0 }
 0x409   : > { %v1570_v8 = vpop.f32.mrb[33].mxu0 }
 0x40a   : > { %v3437_v9 = vpop.f32.mrb[34].mxu0 }
 0x40b   : > { %v3707_v11 = vpack.c.bf16 %v3437_v9, %v3436_v7  ;;  %v1573_v12 = vpop.f32.mrb[35].mxu0  ;;  %v254_v7 = vld [vmem:[#allocation4 + $0xb0] sm:$0xff] }
 0x40c   : > { %v3704_v13 = vpack.c.bf16 %v1573_v12, %v1570_v8 }
 0x410   : > { %v3440_v14 = vpop.f32.mrb[36].mxu0 }
 0x411   : > { %v1586_v16 = vpop.f32.mrb[37].mxu0 }
 0x412   : > { %v3441_v17 = vpop.f32.mrb[38].mxu0 }
 0x44f   : > { %v3392_v60 = vpop.f32.mrb[6].mxu1 }
 0x450   : > { %v913_v61 = vpop.f32.mrb[7].mxu1 }
 0x451   : > { %3394 = vmatpush3.msra.mxu1 %v913_v61 }
 0x452   : > { %3396 = vmatmul.mubr.msk.f32.vlgmr.msra.gmra.mrb[8].mxu1 %vm712_vm1, %v4314_v53  ;;  %3398 = vmatprep.subr.mxu1 %v4108_v57 }
 0x453   : > { %3399 = vmatpush3.msra.mxu1 %v3392_v60  ;;  %3400 = vmatprep.mubr.msk.f32.mxu1 %vm4107_vm0, %v4108_v57 }
 0x454   : > { %3403 = vmatprep.subr.mxu1 %v252_v1 }
 0x456   : > { %3401 = vmatmul.mubr.msk.f32.vlgmr.msra.gmra.mrb[10].mxu1 %vm712_vm1, %v4318_v55 }
 0x457   : > { %3404 = vmatpush3.msra.mxu1 %v252_v1 }
 0x458   : > { %3408 = vmatprep.subr.mxu1 %v4108_v57 }
 0x525   : > { %v988_v18 = vpop.f32.mrb[8].mxu1 }
 0x526   : > { %v1062_v19 = vmul.f32 0.85, %v988_v18  ;;  %v3397_v21 = vpop.f32.mrb[9].mxu1  ;;  %v3713_v18 = vpack.c.bf16 %v3441_v17, %v3440_v14 }
 0x528   : > { %v1064_v22 = vadd.f32 %v4324_v63, %v1062_v19  ;;  %v1589_v19 = vpop.f32.mrb[39].mxu0 }
 0x529   : > { %v1058_v24 = vpop.f32.mrb[10].mxu1  ;;  %v3710_v21 = vpack.c.bf16 %v1589_v19, %v1586_v16 }
 0x52a   : > { %v1066_v25 = vmax.f32 %v1064_v22, 0.0  ;;  %v1063_v26 = vmul.f32 0.85, %v1058_v24  ;;  %v3402_v27 = vpop.f32.mrb[11].mxu1  ;;  %v3444_v22 = vpop.f32.mrb[40].mxu0 }
 0x52b   : > { %v1602_v24 = vpop.f32.mrb[41].mxu0 }
 0x52c   : > { %v1068_v29 = vsel %vm712_vm1, %v1066_v25, 0.0  ;;  %v1065_v30 = vadd.f32 %v4324_v63, %v1063_v26 }
 0x52d   : > { %v1069_v31 = vrot.slane %v1068_v29, 4 }
 0x52e   : > { %v1067_v32 = vmax.f32 %v1065_v30, 0.0 }
 0x52f   : > { %v1070_v33 = vadd.f32 %v1069_v31, %v1068_v29 }
 0x530   : > { %v1075_v35 = vsel %vm712_vm1, %v1067_v32, 0.0 }
 0x531   : > { %v1071_v36 = vrot.slane %v1070_v33, 2  ;;  %v1076_v37 = vrot.slane %v1075_v35, 4 }
 0x533   : > { %v1072_v38 = vadd.f32 %v1071_v36, %v1070_v33  ;;  %v1077_v41 = vadd.f32 %v1076_v37, %v1075_v35 }
 0x535   : > { %v1073_v42 = vrot.slane %v1072_v38, 1  ;;  %v1078_v43 = vrot.slane %v1077_v41, 2 }
 0x537   : > { %v1074_v44 = vadd.f32 %v1073_v42, %v1072_v38  ;;  %v1079_v45 = vadd.f32 %v1078_v43, %v1077_v41 }
 0x539   : > { %v1082_v46 = vmul.f32 0.125, %v1074_v44  ;;  %v1080_v47 = vrot.slane %v1079_v45, 1 }
 0x53b   : > { %v1084_v48 = vadd.f32 1e-06, %v1082_v46  ;;  %v1081_v49 = vadd.f32 %v1080_v47, %v1079_v45 }
 0x53d   : > { %3961 = vrcp.f32 %v1084_v48  ;;  %v1083_v50 = vmul.f32 0.125, %v1081_v49 }
 0x53f   : > { %v1085_v51 = vadd.f32 1e-06, %v1083_v50 }
 0x541   : > { %3963 = vrcp.f32 %v1085_v51 }
 0x547   : > { %v3962_v52 = vpop.eup %3961 }
 0x548   : > { %v1087_v54 = vmul.f32 %v3962_v52, %v1066_v25  ;;  %v3445_v25 = vpop.f32.mrb[42].mxu0 }
 0x549   : > { %v3719_v26 = vpack.c.bf16 %v3445_v25, %v3444_v22  ;;  %v1605_v27 = vpop.f32.mrb[43].mxu0 }
 0x54a   : > { %v1092_v58 = vand.u32 2147483647, %v1087_v54  ;;  %v1090_v0 = vmax.f32 %v1087_v54, 0.0  ;;  %v3716_v29 = vpack.c.bf16 %v1605_v27, %v1602_v24  ;;  %v3448_v30 = vpop.f32.mrb[44].mxu0 }
 0x54b   : > { %v3964_v59 = vpop.eup %3963  ;;  %v1618_v31 = vpop.f32.mrb[45].mxu0 }
 0x54c   : > { %v1094_v60 = vsub.f32 0.0, %v1092_v58  ;;  %v1089_v61 = vmul.f32 %v3964_v59, %v1067_v32  ;;  %v3449_v32 = vpop.f32.mrb[46].mxu0 }
 0x54d   : > { %v3725_v33 = vpack.c.bf16 %v3449_v32, %v3448_v30  ;;  %v1621_v35 = vpop.f32.mrb[47].mxu0 }
 0x54e   : > { %v1096_v10 = vmul.f32 1.442695, %v1094_v60  ;;  %v1093_v15 = vand.u32 2147483647, %v1089_v61  ;;  %v1091_v4 = vmax.f32 %v1089_v61, 0.0  ;;  %v3722_v36 = vpack.c.bf16 %v1621_v35, %v1618_v31  ;;  %v3452_v37 = vpop.f32.mrb[48].mxu0 }
 0x54f   : > { %v1634_v38 = vpop.f32.mrb[49].mxu0 }
 0x550   : > { %3965 = vpow2.f32 %v1096_v10  ;;  %v1095_v20 = vsub.f32 0.0, %v1093_v15  ;;  %v3453_v41 = vpop.f32.mrb[50].mxu0 }
 0x551   : > { %v3731_v42 = vpack.c.bf16 %v3453_v41, %v3452_v37  ;;  %v1637_v43 = vpop.f32.mrb[51].mxu0 }
 0x552   : > { %v1098_v23 = vmul.f32 1.442695, %v1095_v20  ;;  %v3728_v44 = vpack.c.bf16 %v1637_v43, %v1634_v38  ;;  %v3456_v45 = vpop.f32.mrb[52].mxu0 }
 0x553   : > { %v1650_v46 = vpop.f32.mrb[53].mxu0 }
 0x554   : > { %3967 = vpow2.f32 %v1098_v23  ;;  %v3457_v47 = vpop.f32.mrb[54].mxu0 }
 0x555   : > { %v3737_v48 = vpack.c.bf16 %v3457_v47, %v3456_v45  ;;  %v1653_v49 = vpop.f32.mrb[55].mxu0 }
 0x556   : > { %v3734_v50 = vpack.c.bf16 %v1653_v49, %v1650_v46  ;;  %v3460_v51 = vpop.f32.mrb[56].mxu0 }
 0x557   : > { %v1666_v52 = vpop.f32.mrb[57].mxu0 }
 0x558   : > { %v3461_v54 = vpop.f32.mrb[58].mxu0 }
 0x559   : > { %v3743_v58 = vpack.c.bf16 %v3461_v54, %v3460_v51  ;;  %v1669_v59 = vpop.f32.mrb[59].mxu0 }
 0x55a   : > { %v3966_v28 = vpop.eup %3965  ;;  %v3740_v60 = vpack.c.bf16 %v1669_v59, %v1666_v52  ;;  %v3464_v61 = vpop.f32.mrb[60].mxu0 }
 0x55b   : > { %v1100_v34 = vadd.f32 1.0, %v3966_v28  ;;  %v1682_v10 = vpop.f32.mrb[61].mxu0 }
 0x55c   : > { %v3465_v15 = vpop.f32.mrb[62].mxu0 }
 0x55d   : > { %3969 = vlog2.f32 %v1100_v34  ;;  %v3749_v20 = vpack.c.bf16 %v3465_v15, %v3464_v61  ;;  %v1685_v23 = vpop.f32.mrb[63].mxu0 }
 0x55e   : > { %v3968_v39 = vpop.eup %3967  ;;  %v3746_v28 = vpack.c.bf16 %v1685_v23, %v1682_v10 }
 0x55f   : > { %v1101_v40 = vadd.f32 1.0, %v3968_v39 }
 0x561   : > { %3971 = vlog2.f32 %v1101_v40  ;;  %v253_v40 = vld [vmem:[#allocation4 + $0xa8] sm:$0xff] }
 0x562   : > { %3536 = vmatprep.subr.mxu0 %v253_v40 }
 0x563   : > { %3537 = vmatpush3.msra.mxu0 %v253_v40 }
 0x564   : > { %3546 = vmatprep.subr.mxu0 %v4108_v57 }
 0x567   : > { %v3970_v62 = vpop.eup %3969 }
 0x568   : > { %v1103_v1 = vmul.f32 0.6931472, %v3970_v62 }
 0x56a   : > { %v1106_v2 = vadd.f32 %v1103_v1, %v1090_v0 }
 0x56b   : > { %v3972_v3 = vpop.eup %3971 }
 0x56c   : > { %v1105_v5 = vmul.f32 0.6931472, %v3972_v3  ;;  %3405 = vmatprep.mubr.msk.f32.mxu1 %vm712_vm1, %v1106_v2 }
 0x56e   : > { %v1107_v6 = vadd.f32 %v1105_v5, %v1091_v4 }
 0x570   : > { %3406 = vmatmul.mubr.msk.f32.vlgmr.msra.gmra.mrb[12].mxu1 %vm712_vm1, %v1107_v6 }
 0x571   : > { %3410 = vmatprep.mubr.msk.f32.mxu1 %vm4107_vm0, %v4108_v57 }
 0x643   : > { %v3407_v34 = vpop.f32.mrb[12].mxu1 }
 0x644   : > { %v1180_v39 = vpop.f32.mrb[13].mxu1 }
 0x645   : > { %3409 = vmatpush3.msra.mxu1 %v1180_v39 }
 0x646   : > { %3411 = vmatmul.mubr.msk.f32.vlgmr.msra.gmra.mrb[14].mxu1 %vm712_vm1, %v4314_v53  ;;  %3413 = vmatprep.subr.mxu1 %v4108_v57  ;;  %v208_v53 = vld [vmem:[#allocation4 + $0x8] sm:$0xff] }
 0x647   : > { %3414 = vmatpush3.msra.mxu1 %v3407_v34  ;;  %3415 = vmatprep.mubr.msk.f32.mxu1 %vm4107_vm0, %v4108_v57 }
 0x648   : > { %3703 = vmatprep.subr.bf16.mxu1 %v4106_v56 }
 0x64a   : > { %3416 = vmatmul.mubr.msk.f32.vlgmr.msra.gmra.mrb[16].mxu1 %vm712_vm1, %v4318_v55  ;;  %v209_v55 = vmax.f32 %v208_v53, 0.0 }
 0x64b   : > { %3705 = vmatpush3.bf16.msra.mxu1 %v3704_v13  ;;  %3498 = vmatprep.mubr.msk.f32.mxu1 %vm4107_vm0, %v4108_v57 }
 0x64c   : > { %3706 = vmatprep.subr.bf16.mxu1 %v4106_v56 }
 0x64f   : > { %3708 = vmatpush3.bf16.msra.mxu1 %v3707_v11 }
 0x650   : > { %3709 = vmatprep.subr.bf16.mxu1 %v4106_v56 }
 0x653   : > { %3711 = vmatpush3.bf16.msra.mxu1 %v3710_v21 }
 0x654   : > { %3712 = vmatprep.subr.bf16.mxu1 %v4106_v56 }
 0x657   : > { %3714 = vmatpush3.bf16.msra.mxu1 %v3713_v18 }
 0x658   : > { %3715 = vmatprep.subr.bf16.mxu1 %v4106_v56 }
 0x65b   : > { %3717 = vmatpush3.bf16.msra.mxu1 %v3716_v29 }
 0x65c   : > { %3718 = vmatprep.subr.bf16.mxu1 %v4106_v56 }
 0x65f   : > { %3720 = vmatpush3.bf16.msra.mxu1 %v3719_v26 }
 0x660   : > { %3721 = vmatprep.subr.bf16.mxu1 %v4106_v56 }
 0x663   : > { %3723 = vmatpush3.bf16.msra.mxu1 %v3722_v36 }
 0x664   : > { %3724 = vmatprep.subr.bf16.mxu1 %v4106_v56 }
 0x667   : > { %3726 = vmatpush3.bf16.msra.mxu1 %v3725_v33 }
 0x668   : > { %3727 = vmatprep.subr.bf16.mxu1 %v4106_v56 }
 0x66a   : > { %3499 = vmatmul.mubr.f32.vlgmr.msra.gmra.mrb[18].mxu1 %v209_v55 }
 0x66b   : > { %3729 = vmatpush3.bf16.msra.mxu1 %v3728_v44  ;;  %3533 = vmatprep.mubr.msk.f32.mxu1 %vm4107_vm0, %v4108_v57 }
 0x66c   : > { %3730 = vmatprep.subr.bf16.mxu1 %v4106_v56 }
 0x66f   : > { %3732 = vmatpush3.bf16.msra.mxu1 %v3731_v42 }
 0x670   : > { %3733 = vmatprep.subr.bf16.mxu1 %v4106_v56 }
 0x673   : > { %3735 = vmatpush3.bf16.msra.mxu1 %v3734_v50 }
 0x674   : > { %3736 = vmatprep.subr.bf16.mxu1 %v4106_v56 }
 0x677   : > { %3738 = vmatpush3.bf16.msra.mxu1 %v3737_v48 }
 0x678   : > { %3739 = vmatprep.subr.bf16.mxu1 %v4106_v56 }
 0x67b   : > { %3741 = vmatpush3.bf16.msra.mxu1 %v3740_v60 }
 0x67c   : > { %3742 = vmatprep.subr.bf16.mxu1 %v4106_v56 }
 0x67f   : > { %3744 = vmatpush3.bf16.msra.mxu1 %v3743_v58 }
 0x680   : > { %3745 = vmatprep.subr.bf16.mxu1 %v4106_v56 }
 0x683   : > { %3747 = vmatpush3.bf16.msra.mxu1 %v3746_v28 }
 0x684   : > { %3748 = vmatprep.subr.bf16.mxu1 %v4106_v56 }
 0x687   : > { %3750 = vmatpush3.bf16.msra.mxu1 %v3749_v20 }
 0x688   : > { %3541 = vmatprep.subr.mxu1 %v254_v7 }
 0x68a   : > { %3534 = vmatmul.mubr.f32.vlgmr.msra.gmra.mrb[20].mxu1 %v209_v55  ;;  %v255_v55 = vld [vmem:[#allocation4 + $0xb8] sm:$0xff] }
 0x68b   : > { %3542 = vmatpush3.msra.mxu1 %v254_v7 }
 0x68c   : > { %3551 = vmatprep.subr.mxu1 %v4108_v57 }
 0x719   : > { %v4402_v62 = vpop.f32.mrb[14].mxu1 }
 0x71a   : > { %v3412_v0 = vpop.f32.mrb[15].mxu1 }
 0x71d   : > { %v4404_v1 = vpop.f32.mrb[16].mxu1 }
 0x71e   : > { %v3417_v2 = vpop.f32.mrb[17].mxu1 }
 0x73d   : > { %v4406_v3 = vpop.f32.mrb[18].mxu1 }
 0x73e   : > { %v3500_v4 = vpop.f32.mrb[19].mxu1  ;;  %3538 = vmatprep.mubr.msk.f32.mxu0 %vm712_vm1, %v4406_v3 }
 0x75d   : > { %v4410_v5 = vpop.f32.mrb[20].mxu1 }
 0x75e   : > { %v3535_v6 = vpop.f32.mrb[21].mxu1  ;;  %3539 = vmatmul.mubr.msk.f32.vlgmr.msra.gmra.mrb[64].mxu0 %vm712_vm1, %v4410_v5 }
 0x75f   : > { %3548 = vmatprep.mubr.msk.f32.mxu0 %vm4107_vm0, %v4108_v57 }
 0x831   : > { %v3540_v8 = vpop.f32.mrb[64].mxu0 }
 0x832   : > { %v1919_v9 = vmul.f32 0.85, %v3540_v8  ;;  %v1909_v11 = vpop.f32.mrb[65].mxu0 }
 0x833   : > { %v1918_v12 = vmul.f32 0.85, %v1909_v11 }
 0x834   : > { %v1921_v13 = vadd.f32 %v4324_v63, %v1919_v9 }
 0x835   : > { %v1920_v14 = vadd.f32 %v4324_v63, %v1918_v12 }
 0x836   : > { %v1923_v16 = vmax.f32 %v1921_v13, 0.0 }
 0x837   : > { %v1922_v17 = vmax.f32 %v1920_v14, 0.0 }
 0x838   : > { %v1931_v18 = vsel %vm712_vm1, %v1923_v16, 0.0 }
 0x839   : > { %v1932_v19 = vrot.slane %v1931_v18, 4  ;;  %v1924_v21 = vsel %vm712_vm1, %v1922_v17, 0.0 }
 0x83a   : > { %v1925_v22 = vrot.slane %v1924_v21, 4 }
 0x83b   : > { %v1933_v24 = vadd.f32 %v1932_v19, %v1931_v18 }
 0x83c   : > { %v1926_v25 = vadd.f32 %v1925_v22, %v1924_v21 }
 0x83d   : > { %v1934_v26 = vrot.slane %v1933_v24, 2 }
 0x83e   : > { %v1927_v27 = vrot.slane %v1926_v25, 2 }
 0x83f   : > { %v1935_v29 = vadd.f32 %v1934_v26, %v1933_v24 }
 0x840   : > { %v1928_v30 = vadd.f32 %v1927_v27, %v1926_v25 }
 0x841   : > { %v1936_v31 = vrot.slane %v1935_v29, 1 }
 0x842   : > { %v1929_v32 = vrot.slane %v1928_v30, 1 }
 0x843   : > { %v1937_v33 = vadd.f32 %v1936_v31, %v1935_v29 }
 0x844   : > { %v1930_v35 = vadd.f32 %v1929_v32, %v1928_v30 }
 0x845   : > { %v1939_v36 = vmul.f32 0.125, %v1937_v33 }
 0x846   : > { %v1938_v37 = vmul.f32 0.125, %v1930_v35 }
 0x847   : > { %v1941_v38 = vadd.f32 1e-06, %v1939_v36 }
 0x848   : > { %v1940_v41 = vadd.f32 1e-06, %v1938_v37 }
 0x849   : > { %3973 = vrcp.f32 %v1941_v38 }
 0x84a   : > { %3975 = vrcp.f32 %v1940_v41 }
 0x853   : > { %v3974_v42 = vpop.eup %3973 }
 0x854   : > { %v3976_v43 = vpop.eup %3975  ;;  %v1945_v44 = vmul.f32 %v3974_v42, %v1923_v16 }
 0x855   : > { %v1943_v45 = vmul.f32 %v3976_v43, %v1922_v17 }
 0x856   : > { %v1949_v46 = vand.u32 2147483647, %v1945_v44  ;;  %v1947_v23 = vmax.f32 %v1945_v44, 0.0 }
 0x857   : > { %v1948_v47 = vand.u32 2147483647, %v1943_v45  ;;  %v1946_v15 = vmax.f32 %v1943_v45, 0.0 }
 0x858   : > { %v1951_v48 = vsub.f32 0.0, %v1949_v46 }
 0x859   : > { %v1950_v49 = vsub.f32 0.0, %v1948_v47 }
 0x85a   : > { %v1954_v50 = vmul.f32 1.442695, %v1951_v48 }
 0x85b   : > { %v1952_v51 = vmul.f32 1.442695, %v1950_v49 }
 0x85c   : > { %3977 = vpow2.f32 %v1954_v50 }
 0x85d   : > { %3979 = vpow2.f32 %v1952_v51 }
 0x866   : > { %v3978_v52 = vpop.eup %3977 }
 0x867   : > { %v3980_v54 = vpop.eup %3979  ;;  %v1957_v58 = vadd.f32 1.0, %v3978_v52 }
 0x868   : > { %v1956_v59 = vadd.f32 1.0, %v3980_v54 }
 0x869   : > { %3981 = vlog2.f32 %v1957_v58 }
 0x86a   : > { %3983 = vlog2.f32 %v1956_v59 }
 0x873   : > { %v3982_v60 = vpop.eup %3981 }
 0x874   : > { %v3984_v61 = vpop.eup %3983  ;;  %v1961_v10 = vmul.f32 0.6931472, %v3982_v60 }
 0x875   : > { %v1959_v20 = vmul.f32 0.6931472, %v3984_v61 }
 0x876   : > { %v1963_v34 = vadd.f32 %v1961_v10, %v1947_v23 }
 0x877   : > { %v1962_v28 = vadd.f32 %v1959_v20, %v1946_v15 }
 0x879   : > { %3543 = vmatprep.mubr.msk.f32.mxu1 %vm712_vm1, %v1962_v28 }
 0x87a   : > { %3544 = vmatmul.mubr.msk.f32.vlgmr.msra.gmra.mrb[22].mxu1 %vm712_vm1, %v1963_v34 }
 0x87b   : > { %3553 = vmatprep.mubr.msk.f32.mxu1 %vm4107_vm0, %v4108_v57 }
 0x94d   : > { %v3545_v39 = vpop.f32.mrb[22].mxu1 }
 0x94e   : > { %v2036_v53 = vpop.f32.mrb[23].mxu1  ;;  %3552 = vmatpush3.msra.mxu1 %v3545_v39 }
 0x94f   : > { %3547 = vmatpush3.msra.mxu0 %v2036_v53  ;;  %3554 = vmatmul.mubr.msk.f32.vlgmr.msra.gmra.mrb[24].mxu1 %vm712_vm1, %v4410_v5 }
 0x950   : > { %3549 = vmatmul.mubr.msk.f32.vlgmr.msra.gmra.mrb[66].mxu0 %vm712_vm1, %v4406_v3  ;;  %3561 = vmatprep.subr.mxu1 %v4108_v57 }
 0x951   : > { %3563 = vmatprep.mubr.msk.f32.mxu1 %vm4107_vm0, %v4108_v57  ;;  %3556 = vmatprep.subr.mxu0 %v255_v55 }
 0x952   : > { %3557 = vmatpush3.msra.mxu0 %v255_v55 }
 0x953   : > { %3566 = vmatprep.subr.mxu0 %v4108_v57 }
 0xa22   : > { %v2181_v40 = vpop.f32.mrb[24].mxu1 }
 0xa23   : > { %v2186_v0 = vmul.f32 0.85, %v2181_v40  ;;  %v2111_v2 = vpop.f32.mrb[66].mxu0  ;;  %v3555_v4 = vpop.f32.mrb[25].mxu1 }
 0xa24   : > { %v2185_v6 = vmul.f32 0.85, %v2111_v2  ;;  %v3550_v7 = vpop.f32.mrb[67].mxu0 }
 0xa25   : > { %v2188_v8 = vadd.f32 %v4324_v63, %v2186_v0 }
 0xa26   : > { %v2187_v9 = vadd.f32 %v4324_v63, %v2185_v6 }
 0xa27   : > { %v2190_v11 = vmax.f32 %v2188_v8, 0.0 }
 0xa28   : > { %v2189_v12 = vmax.f32 %v2187_v9, 0.0 }
 0xa29   : > { %v2198_v13 = vsel %vm712_vm1, %v2190_v11, 0.0 }
 0xa2a   : > { %v2199_v14 = vrot.slane %v2198_v13, 4  ;;  %v2191_v16 = vsel %vm712_vm1, %v2189_v12, 0.0 }
 0xa2b   : > { %v2192_v17 = vrot.slane %v2191_v16, 4 }
 0xa2c   : > { %v2200_v18 = vadd.f32 %v2199_v14, %v2198_v13 }
 0xa2d   : > { %v2193_v19 = vadd.f32 %v2192_v17, %v2191_v16 }
 0xa2e   : > { %v2201_v21 = vrot.slane %v2200_v18, 2 }
 0xa2f   : > { %v2194_v22 = vrot.slane %v2193_v19, 2 }
 0xa30   : > { %v2202_v24 = vadd.f32 %v2201_v21, %v2200_v18 }
 0xa31   : > { %v2195_v25 = vadd.f32 %v2194_v22, %v2193_v19 }
 0xa32   : > { %v2203_v26 = vrot.slane %v2202_v24, 1 }
 0xa33   : > { %v2196_v27 = vrot.slane %v2195_v25, 1 }
 0xa34   : > { %v2204_v29 = vadd.f32 %v2203_v26, %v2202_v24 }
 0xa35   : > { %v2197_v30 = vadd.f32 %v2196_v27, %v2195_v25 }
 0xa36   : > { %v2206_v31 = vmul.f32 0.125, %v2204_v29 }
 0xa37   : > { %v2205_v32 = vmul.f32 0.125, %v2197_v30 }
 0xa38   : > { %v2208_v33 = vadd.f32 1e-06, %v2206_v31 }
 0xa39   : > { %v2207_v35 = vadd.f32 1e-06, %v2205_v32 }
 0xa3a   : > { %3985 = vrcp.f32 %v2208_v33 }
 0xa3b   : > { %3987 = vrcp.f32 %v2207_v35 }
 0xa44   : > { %v3986_v36 = vpop.eup %3985 }
 0xa45   : > { %v3988_v37 = vpop.eup %3987  ;;  %v2212_v38 = vmul.f32 %v3986_v36, %v2190_v11 }
 0xa46   : > { %v2210_v41 = vmul.f32 %v3988_v37, %v2189_v12 }
 0xa47   : > { %v2216_v42 = vand.u32 2147483647, %v2212_v38  ;;  %v2214_v61 = vmax.f32 %v2212_v38, 0.0 }
 0xa48   : > { %v2215_v43 = vand.u32 2147483647, %v2210_v41  ;;  %v2213_v59 = vmax.f32 %v2210_v41, 0.0 }
 0xa49   : > { %v2218_v44 = vsub.f32 0.0, %v2216_v42 }
 0xa4a   : > { %v2217_v45 = vsub.f32 0.0, %v2215_v43 }
 0xa4b   : > { %v2221_v46 = vmul.f32 1.442695, %v2218_v44 }
 0xa4c   : > { %v2219_v47 = vmul.f32 1.442695, %v2217_v45 }
 0xa4d   : > { %3989 = vpow2.f32 %v2221_v46 }
 0xa4e   : > { %3991 = vpow2.f32 %v2219_v47 }
 0xa57   : > { %v3990_v48 = vpop.eup %3989 }
 0xa58   : > { %v3992_v49 = vpop.eup %3991  ;;  %v2224_v50 = vadd.f32 1.0, %v3990_v48 }
 0xa59   : > { %v2223_v51 = vadd.f32 1.0, %v3992_v49 }
 0xa5a   : > { %3993 = vlog2.f32 %v2224_v50 }
 0xa5b   : > { %3995 = vlog2.f32 %v2223_v51 }
 0xa64   : > { %v3994_v52 = vpop.eup %3993 }
 0xa65   : > { %v3996_v54 = vpop.eup %3995  ;;  %v2228_v58 = vmul.f32 0.6931472, %v3994_v52 }
 0xa66   : > { %v2226_v60 = vmul.f32 0.6931472, %v3996_v54 }
 0xa67   : > { %v2230_v15 = vadd.f32 %v2228_v58, %v2214_v61  ;;  %v1329_v58 = vmul.f32 0.85, %v4402_v62  ;;  %v257_v61 = vld [vmem:[#allocation4 + $0xc8] sm:$0xff] }
 0xa68   : > { %v2229_v10 = vadd.f32 %v2226_v60, %v2213_v59  ;;  %v1330_v59 = vmul.f32 0.85, %v4404_v1  ;;  %v256_v60 = vld [vmem:[#allocation4 + $0xc0] sm:$0xff]  ;;  %v261_v62 = vld [vmem:[#allocation4 + $0xe8] sm:$0xff] }
 0xa6a   : > { %3558 = vmatprep.mubr.msk.f32.mxu0 %vm712_vm1, %v2229_v10  ;;  %v258_v10 = vld [vmem:[#allocation4 + $0xd0] sm:$0xff] }
 0xa6b   : > { %3559 = vmatmul.mubr.msk.f32.vlgmr.msra.gmra.mrb[68].mxu0 %vm712_vm1, %v2230_v15  ;;  %v3752_v15 = vpack.c.bf16 %v257_v61, %v256_v60 }
 0xa6c   : > { %3568 = vmatprep.mubr.msk.f32.mxu0 %vm4107_vm0, %v4108_v57 }
 0xb3e   : > { %v3560_v20 = vpop.f32.mrb[68].mxu0 }
 0xb3f   : > { %v2303_v23 = vpop.f32.mrb[69].mxu0  ;;  %3567 = vmatpush3.msra.mxu0 %v3560_v20  ;;  %v259_v20 = vld [vmem:[#allocation4 + $0xd8] sm:$0xff] }
 0xb40   : > { %3562 = vmatpush3.msra.mxu1 %v2303_v23  ;;  %3569 = vmatmul.mubr.msk.f32.vlgmr.msra.gmra.mrb[70].mxu0 %vm712_vm1, %v4410_v5  ;;  %v1331_v23 = vadd.f32 %v4324_v63, %v1329_v58  ;;  %v267_v58 = vld [vmem:[#allocation4 + $0x118] sm:$0xff] }
 0xb41   : > { %3564 = vmatmul.mubr.msk.f32.vlgmr.msra.gmra.mrb[26].mxu1 %vm712_vm1, %v4406_v3  ;;  %3751 = vmatprep.subr.bf16.mxu1 %v4106_v56 }
 0xb42   : > { %3775 = vmatprep.subr.bf16.mxu0 %v4106_v56  ;;  %3603 = vmatprep.mubr.msk.f32.mxu1 %vm4107_vm0, %v4108_v57 }
 0xb43   : > { %3638 = vmatprep.mubr.msk.f32.mxu0 %vm4107_vm0, %v4108_v57  ;;  %3753 = vmatpush3.bf16.msra.mxu1 %v3752_v15 }
 0xb44   : > { %3777 = vmatpush3.bf16.msra.mxu0 %v3752_v15  ;;  %3754 = vmatprep.subr.bf16.mxu1 %v4106_v56 }
 0xb45   : > { %3778 = vmatprep.subr.bf16.mxu0 %v4106_v56 }
 0xc13   : > { %v2448_v28 = vpop.f32.mrb[70].mxu0 }
 0xc14   : > { %v2453_v34 = vmul.f32 0.85, %v2448_v28  ;;  %v2378_v39 = vpop.f32.mrb[26].mxu1  ;;  %v3570_v53 = vpop.f32.mrb[71].mxu0  ;;  %v1332_v28 = vadd.f32 %v4324_v63, %v1330_v59 }
 0xc15   : > { %v2452_v55 = vmul.f32 0.85, %v2378_v39  ;;  %v3565_v40 = vpop.f32.mrb[27].mxu1  ;;  %v260_v39 = vld [vmem:[#allocation4 + $0xe0] sm:$0xff]  ;;  %v1333_v53 = vmax.f32 %v1331_v23, 0.0 }
 0xc16   : > { %v2455_v5 = vadd.f32 %v4324_v63, %v2453_v34  ;;  %v3755_v34 = vpack.c.bf16 %v259_v20, %v258_v10  ;;  %v1334_v1 = vmax.f32 %v1332_v28, 0.0  ;;  %v262_v40 = vld [vmem:[#allocation4 + $0xf0] sm:$0xff] }
 0xc17   : > { %v2454_v3 = vadd.f32 %v4324_v63, %v2452_v55  ;;  %v3758_v55 = vpack.c.bf16 %v261_v62, %v260_v39  ;;  %v263_v63 = vld [vmem:[#allocation4 + $0xf8] sm:$0xff] }
 0xc18   : > { %v2457_v0 = vmax.f32 %v2455_v5, 0.0  ;;  %3756 = vmatpush3.bf16.msra.mxu1 %v3755_v34  ;;  %3780 = vmatpush3.bf16.msra.mxu0 %v3755_v34  ;;  %v1335_v5 = vsel %vm712_vm1, %v1333_v53, 0.0 }
 0xc19   : > { %v2456_v2 = vmax.f32 %v2454_v3, 0.0  ;;  %3757 = vmatprep.subr.bf16.mxu1 %v4106_v56  ;;  %3781 = vmatprep.subr.bf16.mxu0 %v4106_v56  ;;  %v1342_v3 = vsel %vm712_vm1, %v1334_v1, 0.0 }
 0xc1a   : > { %v2465_v4 = vsel %vm712_vm1, %v2457_v0, 0.0 }
 0xc1b   : > { %v2466_v6 = vrot.slane %v2465_v4, 4  ;;  %v2458_v7 = vsel %vm712_vm1, %v2456_v2, 0.0 }
 0xc1c   : > { %v2459_v8 = vrot.slane %v2458_v7, 4  ;;  %3759 = vmatpush3.bf16.msra.mxu1 %v3758_v55  ;;  %3783 = vmatpush3.bf16.msra.mxu0 %v3758_v55  ;;  %v269_v55 = vld [vmem:[#allocation4 + $0x128] sm:$0xff] }
 0xc1d   : > { %v2467_v9 = vadd.f32 %v2466_v6, %v2465_v4  ;;  %3760 = vmatprep.subr.bf16.mxu1 %v4106_v56  ;;  %3784 = vmatprep.subr.bf16.mxu0 %v4106_v56  ;;  %v1343_v4 = vrot.slane %v1342_v3, 4 }
 0xc1e   : > { %v2460_v11 = vadd.f32 %v2459_v8, %v2458_v7 }
 0xc1f   : > { %v2468_v12 = vrot.slane %v2467_v9, 2  ;;  %v1344_v7 = vadd.f32 %v1343_v4, %v1342_v3 }
 0xc20   : > { %v2461_v13 = vrot.slane %v2460_v11, 2 }
 0xc21   : > { %v2469_v14 = vadd.f32 %v2468_v12, %v2467_v9  ;;  %v1345_v9 = vrot.slane %v1344_v7, 2 }
 0xc22   : > { %v2462_v16 = vadd.f32 %v2461_v13, %v2460_v11 }
 0xc23   : > { %v2470_v17 = vrot.slane %v2469_v14, 1  ;;  %v1346_v12 = vadd.f32 %v1345_v9, %v1344_v7 }
 0xc24   : > { %v2463_v18 = vrot.slane %v2462_v16, 1 }
 0xc25   : > { %v2471_v19 = vadd.f32 %v2470_v17, %v2469_v14  ;;  %v1347_v14 = vrot.slane %v1346_v12, 1 }
 0xc26   : > { %v2464_v21 = vadd.f32 %v2463_v18, %v2462_v16 }
 0xc27   : > { %v2473_v22 = vmul.f32 0.125, %v2471_v19  ;;  %v1348_v17 = vadd.f32 %v1347_v14, %v1346_v12 }
 0xc28   : > { %v2472_v24 = vmul.f32 0.125, %v2464_v21 }
 0xc29   : > { %v2475_v25 = vadd.f32 1e-06, %v2473_v22  ;;  %v1350_v19 = vmul.f32 0.125, %v1348_v17 }
 0xc2a   : > { %v2474_v26 = vadd.f32 1e-06, %v2472_v24 }
 0xc2b   : > { %3997 = vrcp.f32 %v2475_v25  ;;  %v1352_v22 = vadd.f32 1e-06, %v1350_v19 }
 0xc2c   : > { %3999 = vrcp.f32 %v2474_v26 }
 0xc35   : > { %v3998_v27 = vpop.eup %3997 }
 0xc36   : > { %v4000_v29 = vpop.eup %3999  ;;  %v2479_v30 = vmul.f32 %v3998_v27, %v2457_v0  ;;  %v3761_v0 = vpack.c.bf16 %v263_v63, %v262_v40 }
 0xc37   : > { %v2477_v31 = vmul.f32 %v4000_v29, %v2456_v2  ;;  %v1336_v2 = vrot.slane %v1335_v5, 4 }
 0xc38   : > { %v2483_v32 = vand.u32 2147483647, %v2479_v30  ;;  %v2481_v47 = vmax.f32 %v2479_v30, 0.0  ;;  %3762 = vmatpush3.bf16.msra.mxu1 %v3761_v0  ;;  %3786 = vmatpush3.bf16.msra.mxu0 %v3761_v0  ;;  %v270_v0 = vld [vmem:[#allocation4 + $0x130] sm:$0xff] }
 0xc39   : > { %v2482_v33 = vand.u32 2147483647, %v2477_v31  ;;  %v2480_v49 = vmax.f32 %v2477_v31, 0.0  ;;  %3763 = vmatprep.subr.bf16.mxu1 %v4106_v56  ;;  %3787 = vmatprep.subr.bf16.mxu0 %v4106_v56  ;;  %v1337_v6 = vadd.f32 %v1336_v2, %v1335_v5  ;;  %v271_v2 = vld [vmem:[#allocation4 + $0x138] sm:$0xff] }
 0xc3a   : > { %v2485_v35 = vsub.f32 0.0, %v2483_v32 }
 0xc3b   : > { %v2484_v36 = vsub.f32 0.0, %v2482_v33  ;;  %v1338_v8 = vrot.slane %v1337_v6, 2 }
 0xc3c   : > { %v2488_v37 = vmul.f32 1.442695, %v2485_v35 }
 0xc3d   : > { %v2486_v38 = vmul.f32 1.442695, %v2484_v36  ;;  %v1339_v11 = vadd.f32 %v1338_v8, %v1337_v6 }
 0xc3e   : > { %4001 = vpow2.f32 %v2488_v37 }
 0xc3f   : > { %4003 = vpow2.f32 %v2486_v38  ;;  %v1340_v13 = vrot.slane %v1339_v11, 1 }
 0xc41   : > { %v1341_v16 = vadd.f32 %v1340_v13, %v1339_v11  ;;  %v3773_v13 = vpack.c.bf16 %v271_v2, %v270_v0 }
 0xc43   : > { %v1349_v18 = vmul.f32 0.125, %v1341_v16 }
 0xc45   : > { %v1351_v21 = vadd.f32 1e-06, %v1349_v18 }
 0xc48   : > { %v4002_v41 = vpop.eup %4001 }
 0xc49   : > { %v4004_v42 = vpop.eup %4003  ;;  %v2491_v43 = vadd.f32 1.0, %v4002_v41 }
 0xc4a   : > { %v2490_v44 = vadd.f32 1.0, %v4004_v42 }
 0xc4b   : > { %4005 = vlog2.f32 %v2491_v43 }
 0xc4c   : > { %4007 = vlog2.f32 %v2490_v44 }
 0xc4d   : > { %4009 = vrcp.f32 %v1351_v21 }
 0xc4e   : > { %4011 = vrcp.f32 %v1352_v22 }
 0xc55   : > { %v4006_v45 = vpop.eup %4005 }
 0xc56   : > { %v4008_v46 = vpop.eup %4007  ;;  %v2495_v48 = vmul.f32 0.6931472, %v4006_v45  ;;  %v264_v45 = vld [vmem:[#allocation4 + $0x100] sm:$0xff] }
 0xc57   : > { %v2493_v50 = vmul.f32 0.6931472, %v4008_v46  ;;  %v4010_v24 = vpop.eup %4009  ;;  %v265_v46 = vld [vmem:[#allocation4 + $0x108] sm:$0xff] }
 0xc58   : > { %v2497_v51 = vadd.f32 %v2495_v48, %v2481_v47  ;;  %v4012_v25 = vpop.eup %4011  ;;  %v1354_v26 = vmul.f32 %v4010_v24, %v1333_v53  ;;  %v3764_v48 = vpack.c.bf16 %v265_v46, %v264_v45 }
 0xc59   : > { %v2496_v52 = vadd.f32 %v2493_v50, %v2480_v49  ;;  %v1356_v27 = vmul.f32 %v4012_v25, %v1334_v1  ;;  %v268_v1 = vld [vmem:[#allocation4 + $0x120] sm:$0xff] }
 0xc5a   : > { %v1359_v29 = vand.u32 2147483647, %v1354_v26  ;;  %v1357_v49 = vmax.f32 %v1354_v26, 0.0  ;;  %3765 = vmatpush3.bf16.msra.mxu1 %v3764_v48  ;;  %3789 = vmatpush3.bf16.msra.mxu0 %v3764_v48  ;;  %v3770_v4 = vpack.c.bf16 %v269_v55, %v268_v1 }
 0xc5b   : > { %v3877_v54 = vpack.i.bf16 %v2497_v51, %v2496_v52  ;;  %v1360_v30 = vand.u32 2147483647, %v1356_v27  ;;  %v1358_v50 = vmax.f32 %v1356_v27, 0.0  ;;  %3766 = vmatprep.subr.bf16.mxu1 %v4106_v56  ;;  %3790 = vmatprep.subr.bf16.mxu0 %v4106_v56 }
 0xc5c   : > { %v1361_v31 = vsub.f32 0.0, %v1359_v29 }
 0xc5d   : > { %3878 = vrot.lane.b32.xlu0 %v3877_v54, %s4110_s19  ;;  %v1362_v32 = vsub.f32 0.0, %v1360_v30  ;;  %v266_v54 = vld [vmem:[#allocation4 + $0x110] sm:$0xff] }
 0xc5e   : > { %v1363_v33 = vmul.f32 1.442695, %v1361_v31  ;;  %v3767_v10 = vpack.c.bf16 %v267_v58, %v266_v54 }
 0xc5f   : > { %v1365_v35 = vmul.f32 1.442695, %v1362_v32 }
 0xc60   : > { %4013 = vpow2.f32 %v1363_v33  ;;  %3768 = vmatpush3.bf16.msra.mxu1 %v3767_v10  ;;  %3792 = vmatpush3.bf16.msra.mxu0 %v3767_v10 }
 0xc61   : > { %4015 = vpow2.f32 %v1365_v35  ;;  %3769 = vmatprep.subr.bf16.mxu1 %v4106_v56  ;;  %3793 = vmatprep.subr.bf16.mxu0 %v4106_v56 }
 0xc64   : > { %3771 = vmatpush3.bf16.msra.mxu1 %v3770_v4  ;;  %3795 = vmatpush3.bf16.msra.mxu0 %v3770_v4 }
 0xc65   : > { %3772 = vmatprep.subr.bf16.mxu1 %v4106_v56  ;;  %3796 = vmatprep.subr.bf16.mxu0 %v4106_v56 }
 0xc68   : > { %3774 = vmatpush3.bf16.msra.mxu1 %v3773_v13  ;;  %3798 = vmatpush3.bf16.msra.mxu0 %v3773_v13 }
 0xc69   : > { %3799 = vmatprep.subr.bf16.mxu1 %v4106_v56  ;;  %3802 = vmatprep.subr.bf16.mxu0 %v4106_v56 }
 0xc6a   : > { %v4014_v36 = vpop.eup %4013 }
 0xc6b   : > { %v4016_v37 = vpop.eup %4015  ;;  %v1367_v38 = vadd.f32 1.0, %v4014_v36 }
 0xc6c   : > { %v1368_v41 = vadd.f32 1.0, %v4016_v37 }
 0xc6d   : > { %4017 = vlog2.f32 %v1367_v38 }
 0xc6e   : > { %4019 = vlog2.f32 %v1368_v41 }
 0xc77   : > { %v4018_v42 = vpop.eup %4017 }
 0xc78   : > { %v4020_v43 = vpop.eup %4019  ;;  %v1370_v44 = vmul.f32 0.6931472, %v4018_v42 }
 0xc79   : > { %v1372_v47 = vmul.f32 0.6931472, %v4020_v43 }
 0xc7a   : > { %v1373_v51 = vadd.f32 %v1370_v44, %v1357_v49 }
 0xc7b   : > { %v1374_v59 = vadd.f32 %v1372_v47, %v1358_v50 }
 0xccf   : > { %v3879_v52 = vpop.permute.xlu0 %3878 }
 0xcd0   : > { %v3881_v60 = vunpack.i.h.bf16 %v3879_v52  ;;  %v3880_v61 = vunpack.i.l.bf16 %v3879_v52 }
 0xcd2   : > { %v4472_v15 = vsel %vm712_vm1, %v1374_v59, %v3881_v60  ;;  %v4475_v20 = vsel %vm712_vm1, %v1373_v51, %v3880_v61 }
 0xcd3   : > { %v2518_v23 = vrot.slane %v4475_v20, 2  ;;  %v2519_v28 = vrot.slane %v4472_v15, 2  ;;  %v2510_v34 = vrot.slane %v4475_v20, 1  ;;  %v2511_v39 = vrot.slane %v4472_v15, 1 }
 0xcd4   : > { %v2534_v62 = vrot.slane %v4475_v20, 4  ;;  %v2535_v53 = vrot.slane %v4472_v15, 4  ;;  %v2526_v5 = vrot.slane %v4475_v20, 3  ;;  %v2527_v3 = vrot.slane %v4472_v15, 3 }
 0xcd5   : > { %v3887_v40 = vpack.i.bf16 %v2519_v28, %v2518_v23  ;;  %v3882_v63 = vpack.i.bf16 %v2511_v39, %v2510_v34  ;;  %v2550_v7 = vrot.slane %v4475_v20, 6  ;;  %v2551_v8 = vrot.slane %v4472_v15, 6  ;;  %v275_v23 = vld [vmem:[#allocation4 + $0x150] sm:$0xff]  ;;  %v272_v34 = vld [vmem:[#allocation4 + $0x140] sm:$0x1] }
 0xcd6   : > { %v3897_v6 = vpack.i.bf16 %v2535_v53, %v2534_v62  ;;  %v3892_v9 = vpack.i.bf16 %v2527_v3, %v2526_v5  ;;  %v2542_v11 = vrot.slane %v4475_v20, 5  ;;  %v2543_v12 = vrot.slane %v4472_v15, 5 }
 0xcd7   : > { %3888 = vrot.lane.b32.xlu0 %v3887_v40, %s4111_s20  ;;  %3883 = vrot.lane.b32.xlu1 %v3882_v63, %s4112_s21  ;;  %v3907_v14 = vpack.i.bf16 %v2551_v8, %v2550_v7  ;;  %v2558_v17 = vrot.slane %v4475_v20, 7  ;;  %v2559_v18 = vrot.slane %v4472_v15, 7  ;;  %v273_v63 = vld [vmem:[#allocation4 + $0x141] sm:$0x1] }
 0xcd8   : > { %v3902_v16 = vpack.i.bf16 %v2543_v12, %v2542_v11 }
 0xcd9   : > { %v3912_v19 = vpack.i.bf16 %v2559_v18, %v2558_v17 }
 0xcdb   : > { %3898 = vrot.lane.b32.xlu0 %v3897_v6, %s4113_s9  ;;  %3893 = vrot.lane.b32.xlu1 %v3892_v9, %s4114_s25 }
 0xcdf   : > { %3908 = vrot.lane.b32.xlu0 %v3907_v14, %s4115_s26  ;;  %3903 = vrot.lane.b32.xlu1 %v3902_v16, %s4116_s27 }
 0xce3   : > { %3913 = vrot.lane.b32.xlu1 %v3912_v19, %s4117_s28 }
 0xd49   : > { %v3889_v21 = vpop.permute.xlu0 %3888  ;;  %v3884_v22 = vpop.permute.xlu1 %3883 }
 0xd4a   : > { %v3886_v24 = vunpack.i.h.bf16 %v3884_v22  ;;  %v3885_v25 = vunpack.i.l.bf16 %v3884_v22  ;;  %v3891_v26 = vunpack.i.h.bf16 %v3889_v21  ;;  %v3890_v27 = vunpack.i.l.bf16 %v3889_v21 }
 0xd4c   : > { %v2568_v29 = vsel %vm2566_vm3, %v4472_v15, %v3886_v24  ;;  %v2567_v56 = vsel %vm2566_vm3, %v4475_v20, %v3885_v25  ;;  %v274_v20 = vld [vmem:[#allocation4 + $0x148] sm:$0xff] }
 0xd4d   : > { %v3899_v30 = vpop.permute.xlu0 %3898  ;;  %v3894_v31 = vpop.permute.xlu1 %3893  ;;  %v2570_v37 = vsel %vm2569_vm4, %v2567_v56, %v3890_v27  ;;  %v2571_v38 = vsel %vm2569_vm4, %v2568_v29, %v3891_v26  ;;  %v3800_v28 = vpack.c.bf16 %v275_v23, %v274_v20 }
 0xd4e   : > { %v3896_v32 = vunpack.i.h.bf16 %v3894_v31  ;;  %v3895_v33 = vunpack.i.l.bf16 %v3894_v31  ;;  %v3901_v35 = vunpack.i.h.bf16 %v3899_v30  ;;  %v3900_v36 = vunpack.i.l.bf16 %v3899_v30 }
 0xd50   : > { %v2573_v41 = vsel %vm2572_vm5, %v2570_v37, %v3895_v33  ;;  %v2574_v42 = vsel %vm2572_vm5, %v2571_v38, %v3896_v32 }
 0xd51   : > { %v3909_v43 = vpop.permute.xlu0 %3908  ;;  %v3904_v44 = vpop.permute.xlu1 %3903  ;;  %v2576_v49 = vsel %vm2575_vm6, %v2573_v41, %v3900_v36  ;;  %v2577_v50 = vsel %vm2575_vm6, %v2574_v42, %v3901_v35 }
 0xd52   : > { %v3906_v45 = vunpack.i.h.bf16 %v3904_v44  ;;  %v3905_v46 = vunpack.i.l.bf16 %v3904_v44  ;;  %v3911_v47 = vunpack.i.h.bf16 %v3909_v43  ;;  %v3910_v48 = vunpack.i.l.bf16 %v3909_v43 }
 0xd54   : > { %v2579_v51 = vsel %vm2578_vm7, %v2576_v49, %v3905_v46  ;;  %v2580_v52 = vsel %vm2578_vm7, %v2577_v50, %v3906_v45 }
 0xd55   : > { %v3914_v54 = vpop.permute.xlu1 %3913  ;;  %v2582_v60 = vsel %vm2581_vm8, %v2579_v51, %v3910_v48  ;;  %v2583_v61 = vsel %vm2581_vm8, %v2580_v52, %v3911_v47 }
 0xd56   : > { %v3916_v58 = vunpack.i.h.bf16 %v3914_v54  ;;  %v3915_v59 = vunpack.i.l.bf16 %v3914_v54 }
 0xd58   : > { %v2585_v10 = vsel %vm2584_vm9, %v2582_v60, %v3915_v59  ;;  %v2586_v15 = vsel %vm2584_vm9, %v2583_v61, %v3916_v58 }
 0xd59   : > { %3604 = vmatmul.mubr.f32.vlgmr.msra.gmra.mrb[28].mxu1 %v2585_v10  ;;  %3639 = vmatmul.mubr.f32.vlgmr.msra.gmra.mrb[72].mxu0 %v2586_v15 }
 0xd5a   : > { %3645 = vmatprep.mubr.msk.f32.mxu1 %vm4107_vm0, %v4108_v57  ;;  %3652 = vmatprep.mubr.msk.f32.mxu0 %vm4107_vm0, %v4108_v57 }
 0xd5b   : > { %3801 = vmatpush3.bf16.msra.mxu1 %v3800_v28  ;;  %3804 = vmatpush3.bf16.msra.mxu0 %v3800_v28 }
 0xe2c   : > { %v2653_v39 = vpop.f32.mrb[28].mxu1  ;;  %v2723_v62 = vpop.f32.mrb[72].mxu0 }
 0xe2d   : > { %v2654_v53 = vadd.f32 %v2653_v39, %v272_v34  ;;  %v2724_v1 = vadd.f32 %v2723_v62, %v272_v34  ;;  %v3605_v55 = vpop.f32.mrb[29].mxu1  ;;  %v3640_v40 = vpop.f32.mrb[73].mxu0 }
 0xe2f   : > { %3646 = vmatmul.mubr.msk.f32.vlgmr.msra.gmra.mrb[30].mxu1 %vm2566_vm3, %v2654_v53  ;;  %3653 = vmatmul.mubr.msk.f32.vlgmr.msra.gmra.mrb[74].mxu0 %vm2566_vm3, %v2724_v1 }
 0xf02   : > { %v2796_v5 = vpop.f32.mrb[30].mxu1  ;;  %v2869_v3 = vpop.f32.mrb[74].mxu0 }
 0xf03   : > { %v2797_v57 = vadd.f32 %v2796_v5, %v273_v63  ;;  %v2870_v0 = vadd.f32 %v2869_v3, %v273_v63  ;;  %v3647_v2 = vpop.f32.mrb[31].mxu1  ;;  %v3654_v4 = vpop.f32.mrb[75].mxu0 }
 0xf05   : > { %v2877_v6 = vsel %vm2873_vm10, %v2870_v0, -inf  ;;  %v2874_v7 = vsel %vm2873_vm10, %v2797_v57, -inf }
 0xf06   : > { %2878 = vmax.xlane.f32.xlu1 %v2877_v6  ;;  %2875 = vmax.xlane.f32.xlu0 %v2874_v7 }
 0xf93   : > { %v2879_v8 = vpop.xlane.xlu1 %2878  ;;  %v2876_v9 = vpop.xlane.xlu0 %2875 }
 0xf94   : > { %v2881_v11 = vsub.f32 %v2870_v0, %v2879_v8  ;;  %v2880_v12 = vsub.f32 %v2797_v57, %v2876_v9 }
 0xf96   : > { %v2882_v13 = vmul.f32 1.442695, %v2880_v12  ;;  %v2884_v14 = vmul.f32 1.442695, %v2881_v11 }
 0xf98   : > { %4021 = vpow2.f32 %v2882_v13 }
 0xf99   : > { %4023 = vpow2.f32 %v2884_v14 }
 0xfa2   : > { %v4022_v16 = vpop.eup %4021 }
 0xfa3   : > { %v2886_v17 = vsel %vm2873_vm10, %v4022_v16, 0.0  ;;  %v4024_v18 = vpop.eup %4023 }
 0xfa4   : > { %2887 = vadd.xlane.f32.xlu0 %v2886_v17  ;;  %v2889_v19 = vsel %vm2873_vm10, %v4024_v18, 0.0 }
 0xfa8   : > { %2890 = vadd.xlane.f32.xlu0 %v2889_v19 }
0x1031   : > { %v2888_v21 = vpop.xlane.xlu0 %2887 }
0x1032   : > { %4025 = vrcp.f32 %v2888_v21 }
0x1035   : > { %v2891_v22 = vpop.xlane.xlu0 %2890 }
0x1036   : > { %4027 = vrcp.f32 %v2891_v22 }
0x103c   : > { %v4026_v24 = vpop.eup %4025 }
0x103d   : > { %v2893_v25 = vmul.f32 %v4026_v24, %v4022_v16 }
0x103f   : > { %2896 = vst.msk [vmem:[%s203_s4] sm:$0x1] %vm2873_vm10, %v2893_v25 }
0x1040   : > { %v4028_v26 = vpop.eup %4027 }
0x1041   : > { %v2895_v27 = vmul.f32 %v4028_v26, %v4024_v18 }
0x1043   : > { %2897 = vst.msk [vmem:[%s203_s4 + $0x1] sm:$0x1] %vm2873_vm10, %v2895_v27 }
0x1044 PF: > { %p13_p13 = scmp.ge.s32.totalorder %s4153_s14, 4   ;;  %s4548_s9 = smov %s4087_s10 }
0x1045   : > { %s4549_s10 = smov %s4091_s11  ;;  %s4550_s11 = smov %s4163_s17 }
0x1046   : > { %s4551_s12 = smov %s4153_s14  ;;  %15 = sbr.rel (!%p13_p13) target bundleno = 4 (0x4), region = 78 }
0x104d   :  { %2918 = vsyncpa [#allocation3], 1 }
0x104e   :  { %2920 = vsyncpa [#allocation3 + $0x1], 1 }
0x104f   :  { %2921 = vsyncpa [#allocation5], 1 }

</bundles_post_ra>
